<compile_context>
chip_gen: v6e
topology: v6e:2x2x1
jax: 0.10.0
libtpu: 0.0.40
codegen_flags: <defaults>
</compile_context>

<pallas_src>
import jax
import jax.numpy as jnp
from jax import lax
from jax.experimental import pallas as pl
from jax.experimental.pallas import tpu as pltpu


_BAKED_COORD = 1.0e15     # baked coordinate for invalid / padded support points
_FALLBACK_D2 = 1.0e30     # support index 0 is always a candidate at this distance
_INELIGIBLE_D2 = 1.0e37   # invalid-query sentinel (> baked-support d2 ~ 3e30)


def _nearest_gather_kernel(qxyz_ref, qmask_ref, sxyz_ref, supt_ref, feat_ref,
                           nn_ref, feat_out_ref, found_ref, best_d2_ref):
    ni = pl.program_id(2)
    n_sub = sxyz_ref.shape[1] // 128          # static sub-chunk count

    qx = qxyz_ref[0]                          # (3, QT)   queries on lanes
    qm = qmask_ref[0]                         # (1, QT)   query validity (0/1 float)
    q_valid = qm > 0.5

    @pl.when(ni == 0)
    def _init():
        # Seed the running best with the CUDA padding candidate: global support index 0
        # at distance _FALLBACK_D2.  It loses to any real eligible neighbour but wins
        # over "nothing found".
        best_d2_ref[...] = jnp.full(best_d2_ref.shape, _FALLBACK_D2, jnp.float32)
        nn_ref[0] = jnp.broadcast_to(
            supt_ref[0, :, 0:1], nn_ref.shape[1:]).astype(nn_ref.dtype)
        feat_out_ref[0] = jnp.broadcast_to(
            feat_ref[0, :, 0:1], feat_out_ref.shape[1:]).astype(feat_out_ref.dtype)

    row_ids = lax.broadcasted_iota(jnp.int32, (128, 1), 0)   # tiny, hoisted constant

    def body(s, carry):
        best_d2, best_nn, best_feat = carry
        off = pl.multiple_of(s * 128, 128)

        # Squared distances d2[n, q] via VPU broadcasting (exact f32, matches CUDA).
        sp = sxyz_ref[0, pl.ds(off, 128), :]                  # (128, 3) baked coords
        dx = sp[:, 0:1] - qx[0:1, :]
        dy = sp[:, 1:2] - qx[1:2, :]
        dz = sp[:, 2:3] - qx[2:3, :]
        d2 = dx * dx + dy * dy + dz * dz                      # (128, QT)

        # Sub-chunk argmin with lowest-index tie-break.
        raw_min = jnp.min(d2, axis=0, keepdims=True)          # (1, QT)
        cand_rows = jnp.where(d2 == raw_min, row_ids, jnp.int32(128))
        arg_row = jnp.min(cand_rows, axis=0, keepdims=True)   # (1, QT)
        one_hot = (row_ids == arg_row).astype(jnp.float32)    # (128, QT)

        # Exact gather of the winner's xyz / feature columns on the MXU.
        sup_cols = supt_ref[0, :, pl.ds(off, 128)]            # (3, 128) original coords
        feat_cols = feat_ref[0, :, pl.ds(off, 128)]           # (C, 128)
        cand_nn = jnp.dot(sup_cols, one_hot,
                          preferred_element_type=jnp.float32,
                          precision=lax.Precision.HIGHEST)    # (3, QT)
        cand_ft = jnp.dot(feat_cols, one_hot.astype(feat_cols.dtype),
                          preferred_element_type=jnp.float32,
                          precision=lax.Precision.HIGHEST)    # (C, QT)

        # Query-mask applied on the reduced (1, QT) values only.
        chunk_min = jnp.where(q_valid, raw_min, _INELIGIBLE_D2)

        # Strict '<' keeps the earlier (lower global index) chunk on cross-chunk ties;
        # within-chunk ties already resolved to the lowest row.
        upd = chunk_min < best_d2                              # (1, QT)
        best_d2 = jnp.where(upd, chunk_min, best_d2)
        best_nn = jnp.where(upd, cand_nn, best_nn)
        best_feat = jnp.where(upd, cand_ft, best_feat)
        return best_d2, best_nn, best_feat

    carry0 = (best_d2_ref[...],
              nn_ref[0].astype(jnp.float32),
              feat_out_ref[0].astype(jnp.float32))
    best_d2, best_nn, best_feat = lax.fori_loop(0, n_sub, body, carry0,
                                                unroll=(n_sub <= 8))

    best_d2_ref[...] = best_d2
    nn_ref[0] = best_nn.astype(nn_ref.dtype)
    feat_out_ref[0] = best_feat.astype(feat_out_ref.dtype)

    @pl.when(ni == pl.num_programs(2) - 1)
    def _finalize():
        # found <=> a real eligible neighbour was seen (implies the query was valid).
        found_ref[0] = (best_d2 < _FALLBACK_D2).astype(found_ref.dtype)


def _round_up(x, m):
    return ((x + m - 1) // m) * m


def _choose_n_tile(N, C):
    """Largest support chunk (multiple of 128) whose VMEM blocks fit a fixed budget.

    Per-support-row VMEM bytes across the three support streams, with their padded
    layouts ((n,3) lane-padded to 128, (3,n) sublane-padded to 8, (C,n) sublane-padded),
    times 2 for the pipeline's double buffering.
    """
    row_bytes = 2 * (128 * 4 + 8 * 4 + _round_up(max(C, 1), 8) * 4)
    budget = 16 * 2 ** 20          # support-side VMEM budget (both buffers)
    max_rows = max(128, (budget // row_bytes) // 128 * 128)
    return int(min(_round_up(N, 128), max_rows))


def masked_nearest_gather(query_xyz, support_xyz, query_mask, support_mask,
                          features=None, *, q_tile=128):
    """Fused masked nearest-neighbour query + gather.

    query_xyz  (B, Q, 3), support_xyz (B, N, 3), query_mask (B, Q) bool,
    support_mask (B, N) bool, features (B, C, N) or None.
    Returns:
      nn_xyz           (B, 3, Q)  xyz of each query's nearest valid support point
      grouped_features (B, C, Q)  gathered features (None if features is None)
      idx_mask         (B, Q)     bool, True where a valid neighbour was found
    """
    dtype = jnp.float32
    B, Q, _ = query_xyz.shape
    N = support_xyz.shape[1]

    has_features = features is not None
    if has_features:
        feats = features
        if not jnp.issubdtype(feats.dtype, jnp.floating):
            feats = feats.astype(dtype)
    else:
        feats = jnp.zeros((B, 8, N), dtype)     # small dummy stream, discarded
    C = feats.shape[1]

    n_tile = _choose_n_tile(N, C)
    Np = _round_up(N, n_tile)
    Qp = _round_up(Q, q_tile)

    # ---- query side ---------------------------------------------------------
    qxyz_t = jnp.transpose(query_xyz, (0, 2, 1)).astype(dtype)          # (B, 3, Q)
    if Qp != Q:
        qxyz_t = jnp.pad(qxyz_t, ((0, 0), (0, 0), (0, Qp - Q)))
    qmask_f = query_mask.astype(dtype)[:, None, :]                       # (B, 1, Q)
    if Qp != Q:
        qmask_f = jnp.pad(qmask_f, ((0, 0), (0, 0), (0, Qp - Q)))

    # ---- support side -------------------------------------------------------
    # Distance stream: invalid supports baked to a huge coordinate (loses to everything,
    # including the index-0 fallback).  Padded rows get the same baked value.
    sxyz_baked = jnp.where(support_mask[:, :, None],
                           support_xyz.astype(dtype), _BAKED_COORD)      # (B, N, 3)
    if Np != N:
        sxyz_baked = jnp.pad(sxyz_baked, ((0, 0), (0, Np - N), (0, 0)),
                             constant_values=_BAKED_COORD)
    # Gather streams keep the ORIGINAL values (the CUDA idx=0 padding gathers real data).
    supt = jnp.transpose(support_xyz, (0, 2, 1)).astype(dtype)           # (B, 3, N)
    if Np != N:
        supt = jnp.pad(supt, ((0, 0), (0, 0), (0, Np - N)))
    featp = feats
    if Np != N:
        featp = jnp.pad(featp, ((0, 0), (0, 0), (0, Np - N)))

    grid = (B, Qp // q_tile, Np // n_tile)
    # v7x note: B * (Qp // q_tile) parallel tiles feed the two TensorCores.

    nn, gfeat, found = pl.pallas_call(
        _nearest_gather_kernel,
        out_shape=(jax.ShapeDtypeStruct((B, 3, Qp), dtype),
                   jax.ShapeDtypeStruct((B, C, Qp), featp.dtype),
                   jax.ShapeDtypeStruct((B, 1, Qp), dtype)),
        grid=grid,
        in_specs=[
            pl.BlockSpec((1, 3, q_tile), lambda b, qi, ni: (b, 0, qi)),
            pl.BlockSpec((1, 1, q_tile), lambda b, qi, ni: (b, 0, qi)),
            pl.BlockSpec((1, n_tile, 3), lambda b, qi, ni: (b, ni, 0)),
            pl.BlockSpec((1, 3, n_tile), lambda b, qi, ni: (b, 0, ni)),
            pl.BlockSpec((1, C, n_tile), lambda b, qi, ni: (b, 0, ni)),
        ],
        out_specs=(
            pl.BlockSpec((1, 3, q_tile), lambda b, qi, ni: (b, 0, qi)),
            pl.BlockSpec((1, C, q_tile), lambda b, qi, ni: (b, 0, qi)),
            pl.BlockSpec((1, 1, q_tile), lambda b, qi, ni: (b, 0, qi)),
        ),
        scratch_shapes=[pltpu.VMEM((1, q_tile), jnp.float32)],
        compiler_params=pltpu.CompilerParams(
            dimension_semantics=("parallel", "parallel", "arbitrary"),
            vmem_limit_bytes=40 * 2 ** 20),
    )(qxyz_t, qmask_f, sxyz_baked, supt, featp)

    nn_xyz = nn[:, :, :Q]
    idx_mask = found[:, 0, :Q] > 0.5
    grouped_features = gfeat[:, :, :Q] if has_features else None
    return nn_xyz, grouped_features, idx_mask


class MaskedNearestQueryAndGroup:
    """JAX/Pallas port of pt_custom_ops MaskedNearestQueryAndGroup (forward only)."""

    def __init__(self, use_xyz=True, ret_grouped_xyz=False, normalize_xyz=False):
        self.use_xyz = use_xyz
        self.ret_grouped_xyz = ret_grouped_xyz
        self.normalize_xyz = normalize_xyz
        # TODO(synk): normalize_xyz=True divides by self.radius in the PyTorch module, but
        #             that attribute is never defined there either; not supported here.

    def __call__(self, query_xyz, support_xyz, query_mask, support_mask, features=None):
        nn_xyz, grouped_features, idx_mask = masked_nearest_gather(
            query_xyz, support_xyz, query_mask, support_mask, features)
        grouped_xyz = nn_xyz - jnp.transpose(query_xyz, (0, 2, 1))      # (B, 3, Q)
        grouped_xyz = grouped_xyz[..., None]                            # (B, 3, Q, 1) nsample=1
        if features is not None:
            grouped_features = grouped_features[..., None]              # (B, C, Q, 1)
            if self.use_xyz:
                new_features = jnp.concatenate([grouped_xyz, grouped_features], axis=1)
            else:
                new_features = grouped_features
        else:
            assert self.use_xyz, "Cannot have not features and not use xyz as a feature!"
            new_features = grouped_xyz
        # TODO(synk): for a valid query with ZERO valid support points the CUDA kernel's
        #             idx_mask value is ambiguous; here idx_mask = query valid AND neighbour found.
        if self.ret_grouped_xyz:
            return new_features, grouped_xyz, idx_mask
        return new_features, idx_mask


# ----------------------------------------------------------------------------
# Pure-JAX reference (sanity check)
# ----------------------------------------------------------------------------
def _ref_forward(query_xyz, support_xyz, query_mask, support_mask, features, use_xyz=True):
    B, Q, _ = query_xyz.shape
    C = features.shape[1]
    d2 = jnp.sum((query_xyz[:, :, None, :] - support_xyz[:, None, :, :]) ** 2, axis=-1)
    elig = query_mask[:, :, None] & support_mask[:, None, :]
    d2e = jnp.where(elig, d2, jnp.inf)
    found = jnp.isfinite(jnp.min(d2e, axis=-1))
    idx = jnp.where(found, jnp.argmin(d2e, axis=-1), 0)                       # (B, Q)
    nn_xyz = jnp.take_along_axis(
        support_xyz, jnp.broadcast_to(idx[:, :, None], (B, Q, 3)), axis=1)    # (B, Q, 3)
    grouped_xyz = jnp.transpose(nn_xyz - query_xyz, (0, 2, 1))[..., None]     # (B, 3, Q, 1)
    grouped_feat = jnp.take_along_axis(
        features, jnp.broadcast_to(idx[:, None, :], (B, C, Q)), axis=2)[..., None]
    new_features = (jnp.concatenate([grouped_xyz, grouped_feat], axis=1)
                    if use_xyz else grouped_feat)
    return new_features, grouped_xyz, query_mask & found


if __name__ == "__main__":
    B, N, Q, C = 2, 64, 16, 16

    key = jax.random.PRNGKey(0)
    k1, k2, k3 = jax.random.split(key, 3)
    support_xyz = jax.random.uniform(k1, (B, N, 3), dtype=jnp.float32)
    query_xyz = jax.random.uniform(k2, (B, Q, 3), dtype=jnp.float32)
    features = jax.random.normal(k3, (B, C, N), dtype=jnp.float32)
    # deterministic masks: batch 0 has some invalid supports and queries, batch 1 fully valid
    support_mask = jnp.ones((B, N), dtype=bool).at[0, N - 16:].set(False)
    query_mask = jnp.ones((B, Q), dtype=bool).at[0, Q - 4:].set(False)

    grouper = MaskedNearestQueryAndGroup(use_xyz=True, ret_grouped_xyz=True)
    new_features, grouped_xyz, idx_mask = grouper(
        query_xyz, support_xyz, query_mask, support_mask, features)
    new_features = jax.block_until_ready(new_features)

    assert new_features.shape == (B, 3 + C, Q, 1)
    assert grouped_xyz.shape == (B, 3, Q, 1)
    assert idx_mask.shape == (B, Q)

    ref_nf, ref_gx, ref_mask = _ref_forward(
        query_xyz, support_xyz, query_mask, support_mask, features, use_xyz=True)
    assert jnp.allclose(new_features, ref_nf, rtol=1e-5, atol=1e-5), "new_features mismatch"
    assert jnp.allclose(grouped_xyz, ref_gx, rtol=1e-5, atol=1e-5), "grouped_xyz mismatch"
    assert bool(jnp.all(idx_mask == ref_mask)), "idx_mask mismatch"

    print("KERNEL_OK")
</pallas_src>

<mosaic_0001>
module attributes {stable_mosaic.version = 11 : i64} {
  func.func @_nearest_gather_kernel(%arg0: i32, %arg1: i32, %arg2: i32, %arg3: memref<1x3x128xf32, #tpu.memory_space<vmem>>, %arg4: memref<1x1x128xf32, #tpu.memory_space<vmem>>, %arg5: memref<1x128x3xf32, #tpu.memory_space<vmem>>, %arg6: memref<1x3x128xf32, #tpu.memory_space<vmem>>, %arg7: memref<1x16x128xf32, #tpu.memory_space<vmem>>, %arg8: memref<1x3x128xf32, #tpu.memory_space<vmem>>, %arg9: memref<1x16x128xf32, #tpu.memory_space<vmem>>, %arg10: memref<1x1x128xf32, #tpu.memory_space<vmem>>, %arg11: memref<1x128xf32, #tpu.memory_space<vmem>>) attributes {dimension_semantics = [#tpu.dimension_semantics<parallel>, #tpu.dimension_semantics<parallel>, #tpu.dimension_semantics<arbitrary>], iteration_bounds = array<i64: 2, 1, 1>, scalar_prefetch = 0 : i64, scratch_operands = 1 : i64, tpu.core_type = #tpu.core_type<tc>, window_params = [{transform_indices = @transform_0, window_bounds = array<i64: 1, 3, 128>}, {transform_indices = @transform_1, window_bounds = array<i64: 1, 1, 128>}, {transform_indices = @transform_2, window_bounds = array<i64: 1, 128, 3>}, {transform_indices = @transform_3, window_bounds = array<i64: 1, 3, 128>}, {transform_indices = @transform_4, window_bounds = array<i64: 1, 16, 128>}, {transform_indices = @transform_5, window_bounds = array<i64: 1, 3, 128>}, {transform_indices = @transform_6, window_bounds = array<i64: 1, 16, 128>}, {transform_indices = @transform_7, window_bounds = array<i64: 1, 1, 128>}]} {
    %c0 = arith.constant 0 : index
    %c0_0 = arith.constant 0 : index
    %c0_1 = arith.constant 0 : index
    %0 = vector.load %arg3[%c0, %c0_0, %c0_1] : memref<1x3x128xf32, #tpu.memory_space<vmem>>, vector<1x3x128xf32>
    %1 = vector.shape_cast %0 : vector<1x3x128xf32> to vector<3x128xf32>
    %c0_2 = arith.constant 0 : index
    %c0_3 = arith.constant 0 : index
    %c0_4 = arith.constant 0 : index
    %2 = vector.load %arg4[%c0_2, %c0_3, %c0_4] : memref<1x1x128xf32, #tpu.memory_space<vmem>>, vector<1x1x128xf32>
    %3 = vector.shape_cast %2 : vector<1x1x128xf32> to vector<1x128xf32>
    %cst = arith.constant 5.000000e-01 : f32
    %4 = vector.broadcast %cst : f32 to vector<1x128xf32>
    %5 = arith.cmpf ogt, %3, %4 : vector<1x128xf32>
    %c0_i32 = arith.constant 0 : i32
    %6 = arith.cmpi eq, %arg2, %c0_i32 : i32
    %7 = arith.extui %6 : i1 to i32
    %c0_i32_5 = arith.constant 0 : i32
    %8 = arith.cmpi ne, %7, %c0_i32_5 : i32
    scf.if %8 {
      %cst_37 = arith.constant 1.000000e+30 : f32
      %83 = vector.broadcast %cst_37 : f32 to vector<1x128xf32>
      %c0_38 = arith.constant 0 : index
      %c0_39 = arith.constant 0 : index
      %84 = vector.load %arg11[%c0_38, %c0_39] : memref<1x128xf32, #tpu.memory_space<vmem>>, vector<1x128xf32>
      tpu.vector_store %arg11[%c0_38, %c0_39], %83 {strides = array<i32>} : memref<1x128xf32, #tpu.memory_space<vmem>>, vector<1x128xf32>,
      %c0_40 = arith.constant 0 : index
      %c0_41 = arith.constant 0 : index
      %c0_42 = arith.constant 0 : index
      %85 = vector.load %arg6[%c0_40, %c0_41, %c0_42] : memref<1x3x128xf32, #tpu.memory_space<vmem>>, vector<1x3x1xf32>
      %86 = vector.shape_cast %85 : vector<1x3x1xf32> to vector<3x1xf32>
      %87 = vector.shape_cast %86 : vector<3x1xf32> to vector<3x1xf32>
      %88 = vector.broadcast %87 : vector<3x1xf32> to vector<3x128xf32>
      %c0_43 = arith.constant 0 : index
      %c0_44 = arith.constant 0 : index
      %c0_45 = arith.constant 0 : index
      %89 = vector.load %arg8[%c0_43, %c0_44, %c0_45] : memref<1x3x128xf32, #tpu.memory_space<vmem>>, vector<1x3x128xf32>
      %90 = vector.shape_cast %89 : vector<1x3x128xf32> to vector<3x128xf32>
      %91 = vector.shape_cast %88 : vector<3x128xf32> to vector<1x3x128xf32>
      tpu.vector_store %arg8[%c0_43, %c0_44, %c0_45], %91 {strides = array<i32>} : memref<1x3x128xf32, #tpu.memory_space<vmem>>, vector<1x3x128xf32>,
      %c0_46 = arith.constant 0 : index
      %c0_47 = arith.constant 0 : index
      %c0_48 = arith.constant 0 : index
      %92 = vector.load %arg7[%c0_46, %c0_47, %c0_48] : memref<1x16x128xf32, #tpu.memory_space<vmem>>, vector<1x16x1xf32>
      %93 = vector.shape_cast %92 : vector<1x16x1xf32> to vector<16x1xf32>
      %94 = vector.shape_cast %93 : vector<16x1xf32> to vector<16x1xf32>
      %95 = vector.broadcast %94 : vector<16x1xf32> to vector<16x128xf32>
      %c0_49 = arith.constant 0 : index
      %c0_50 = arith.constant 0 : index
      %c0_51 = arith.constant 0 : index
      %96 = vector.load %arg9[%c0_49, %c0_50, %c0_51] : memref<1x16x128xf32, #tpu.memory_space<vmem>>, vector<1x16x128xf32>
      %97 = vector.shape_cast %96 : vector<1x16x128xf32> to vector<16x128xf32>
      %98 = vector.shape_cast %95 : vector<16x128xf32> to vector<1x16x128xf32>
      tpu.vector_store %arg9[%c0_49, %c0_50, %c0_51], %98 {strides = array<i32>} : memref<1x16x128xf32, #tpu.memory_space<vmem>>, vector<1x16x128xf32>,
    } else {
    }
    %9 = tpu.iota {dimensions = array<i32: 0>} : vector<128x1xi32>
    %c0_6 = arith.constant 0 : index
    %c0_7 = arith.constant 0 : index
    %10 = vector.load %arg11[%c0_6, %c0_7] : memref<1x128xf32, #tpu.memory_space<vmem>>, vector<1x128xf32>
    %c0_8 = arith.constant 0 : index
    %c0_9 = arith.constant 0 : index
    %c0_10 = arith.constant 0 : index
    %11 = vector.load %arg8[%c0_8, %c0_9, %c0_10] : memref<1x3x128xf32, #tpu.memory_space<vmem>>, vector<1x3x128xf32>
    %12 = vector.shape_cast %11 : vector<1x3x128xf32> to vector<3x128xf32>
    %c0_11 = arith.constant 0 : index
    %c0_12 = arith.constant 0 : index
    %c0_13 = arith.constant 0 : index
    %13 = vector.load %arg9[%c0_11, %c0_12, %c0_13] : memref<1x16x128xf32, #tpu.memory_space<vmem>>, vector<1x16x128xf32>
    %14 = vector.shape_cast %13 : vector<1x16x128xf32> to vector<16x128xf32>
    %c0_i32_14 = arith.constant 0 : i32
    %c128_i32 = arith.constant 128 : i32
    %15 = arith.muli %c0_i32_14, %c128_i32 : i32
    %16 = tpu.assume_multiple %15, 128 : i32
    %c0_15 = arith.constant 0 : index
    %17 = arith.index_cast %16 : i32 to index
    %c0_16 = arith.constant 0 : index
    %18 = vector.load %arg5[%c0_15, %17, %c0_16] : memref<1x128x3xf32, #tpu.memory_space<vmem>>, vector<1x128x3xf32>
    %19 = vector.shape_cast %18 : vector<1x128x3xf32> to vector<128x3xf32>
    %20 = vector.extract_strided_slice %19 {offsets = [0, 0], sizes = [128, 1], strides = [1, 1]} : vector<128x3xf32> to vector<128x1xf32>
    %21 = vector.extract_strided_slice %1 {offsets = [0, 0], sizes = [1, 128], strides = [1, 1]} : vector<3x128xf32> to vector<1x128xf32>
    %22 = vector.broadcast %20 : vector<128x1xf32> to vector<128x128xf32>
    %23 = vector.broadcast %21 : vector<1x128xf32> to vector<128x128xf32>
    %24 = arith.subf %22, %23 : vector<128x128xf32>
    %25 = vector.extract_strided_slice %19 {offsets = [0, 1], sizes = [128, 1], strides = [1, 1]} : vector<128x3xf32> to vector<128x1xf32>
    %26 = vector.extract_strided_slice %1 {offsets = [1, 0], sizes = [1, 128], strides = [1, 1]} : vector<3x128xf32> to vector<1x128xf32>
    %27 = vector.broadcast %25 : vector<128x1xf32> to vector<128x128xf32>
    %28 = vector.broadcast %26 : vector<1x128xf32> to vector<128x128xf32>
    %29 = arith.subf %27, %28 : vector<128x128xf32>
    %30 = vector.extract_strided_slice %19 {offsets = [0, 2], sizes = [128, 1], strides = [1, 1]} : vector<128x3xf32> to vector<128x1xf32>
    %31 = vector.extract_strided_slice %1 {offsets = [2, 0], sizes = [1, 128], strides = [1, 1]} : vector<3x128xf32> to vector<1x128xf32>
    %32 = vector.broadcast %30 : vector<128x1xf32> to vector<128x128xf32>
    %33 = vector.broadcast %31 : vector<1x128xf32> to vector<128x128xf32>
    %34 = arith.subf %32, %33 : vector<128x128xf32>
    %35 = arith.mulf %24, %24 : vector<128x128xf32>
    %36 = arith.mulf %29, %29 : vector<128x128xf32>
    %37 = arith.addf %35, %36 : vector<128x128xf32>
    %38 = arith.mulf %34, %34 : vector<128x128xf32>
    %39 = arith.addf %37, %38 : vector<128x128xf32>
    %cst_17 = arith.constant dense<0x7F800000> : vector<128xf32>
    %40 = vector.multi_reduction <minimumf>, %39, %cst_17 [0] : vector<128x128xf32> to vector<128xf32>
    %41 = vector.shape_cast %40 : vector<128xf32> to vector<1x128xf32>
    %42 = vector.broadcast %41 : vector<1x128xf32> to vector<128x128xf32>
    %43 = arith.cmpf oeq, %39, %42 : vector<128x128xf32>
    %c128_i32_18 = arith.constant 128 : i32
    %44 = vector.shape_cast %9 : vector<128x1xi32> to vector<128x1xi32>
    %45 = vector.broadcast %44 : vector<128x1xi32> to vector<128x128xi32>
    %46 = vector.broadcast %c128_i32_18 : i32 to vector<128x128xi32>
    %47 = arith.select %43, %45, %46 : vector<128x128xi1>, vector<128x128xi32>
    %cst_19 = arith.constant dense<2147483647> : vector<128xi32>
    %48 = vector.multi_reduction <minsi>, %47, %cst_19 [0] : vector<128x128xi32> to vector<128xi32>
    %49 = vector.shape_cast %48 : vector<128xi32> to vector<1x128xi32>
    %50 = vector.broadcast %9 : vector<128x1xi32> to vector<128x128xi32>
    %51 = vector.broadcast %49 : vector<1x128xi32> to vector<128x128xi32>
    %52 = arith.cmpi eq, %50, %51 : vector<128x128xi32>
    %53 = arith.extui %52 : vector<128x128xi1> to vector<128x128xi32>
    %54 = arith.sitofp %53 : vector<128x128xi32> to vector<128x128xf32>
    %c0_20 = arith.constant 0 : index
    %c0_21 = arith.constant 0 : index
    %55 = arith.index_cast %16 : i32 to index
    %56 = vector.load %arg6[%c0_20, %c0_21, %55] : memref<1x3x128xf32, #tpu.memory_space<vmem>>, vector<1x3x128xf32>
    %57 = vector.shape_cast %56 : vector<1x3x128xf32> to vector<3x128xf32>
    %c0_22 = arith.constant 0 : index
    %c0_23 = arith.constant 0 : index
    %58 = arith.index_cast %16 : i32 to index
    %59 = vector.load %arg7[%c0_22, %c0_23, %58] : memref<1x16x128xf32, #tpu.memory_space<vmem>>, vector<1x16x128xf32>
    %60 = vector.shape_cast %59 : vector<1x16x128xf32> to vector<16x128xf32>
    %cst_24 = arith.constant dense<0.000000e+00> : vector<3x128xf32>
    %61 = tpu.matmul %57, %54, %cst_24 {dimension_numbers = #tpu.dot_dimension_numbers<[1], [0], [0], [1], [0, 0, 1, 1], [], []>, precision = #tpu.contract_precision<fp32>} : vector<3x128xf32>, vector<128x128xf32>, vector<3x128xf32> -> vector<3x128xf32>
    %cst_25 = arith.constant dense<0.000000e+00> : vector<16x128xf32>
    %62 = tpu.matmul %60, %54, %cst_25 {dimension_numbers = #tpu.dot_dimension_numbers<[1], [0], [0], [1], [0, 0, 1, 1], [], []>, precision = #tpu.contract_precision<fp32>} : vector<16x128xf32>, vector<128x128xf32>, vector<16x128xf32> -> vector<16x128xf32>
    %cst_26 = arith.constant 9.99999993E+36 : f32
    %63 = vector.broadcast %cst_26 : f32 to vector<1x128xf32>
    %64 = arith.select %5, %41, %63 : vector<1x128xi1>, vector<1x128xf32>
    %65 = arith.cmpf olt, %64, %10 : vector<1x128xf32>
    %66 = arith.select %65, %64, %10 : vector<1x128xi1>, vector<1x128xf32>
    %67 = vector.shape_cast %65 : vector<1x128xi1> to vector<1x128xi1>
    %68 = vector.broadcast %67 : vector<1x128xi1> to vector<3x128xi1>
    %69 = arith.select %68, %61, %12 : vector<3x128xi1>, vector<3x128xf32>
    %70 = vector.shape_cast %65 : vector<1x128xi1> to vector<1x128xi1>
    %71 = vector.broadcast %70 : vector<1x128xi1> to vector<16x128xi1>
    %72 = arith.select %71, %62, %14 : vector<16x128xi1>, vector<16x128xf32>
    %c1_i32 = arith.constant 1 : i32
    %c0_27 = arith.constant 0 : index
    %c0_28 = arith.constant 0 : index
    %73 = vector.load %arg11[%c0_27, %c0_28] : memref<1x128xf32, #tpu.memory_space<vmem>>, vector<1x128xf32>
    tpu.vector_store %arg11[%c0_27, %c0_28], %66 {strides = array<i32>} : memref<1x128xf32, #tpu.memory_space<vmem>>, vector<1x128xf32>,
    %c0_29 = arith.constant 0 : index
    %c0_30 = arith.constant 0 : index
    %c0_31 = arith.constant 0 : index
    %74 = vector.load %arg8[%c0_29, %c0_30, %c0_31] : memref<1x3x128xf32, #tpu.memory_space<vmem>>, vector<1x3x128xf32>
    %75 = vector.shape_cast %74 : vector<1x3x128xf32> to vector<3x128xf32>
    %76 = vector.shape_cast %69 : vector<3x128xf32> to vector<1x3x128xf32>
    tpu.vector_store %arg8[%c0_29, %c0_30, %c0_31], %76 {strides = array<i32>} : memref<1x3x128xf32, #tpu.memory_space<vmem>>, vector<1x3x128xf32>,
    %c0_32 = arith.constant 0 : index
    %c0_33 = arith.constant 0 : index
    %c0_34 = arith.constant 0 : index
    %77 = vector.load %arg9[%c0_32, %c0_33, %c0_34] : memref<1x16x128xf32, #tpu.memory_space<vmem>>, vector<1x16x128xf32>
    %78 = vector.shape_cast %77 : vector<1x16x128xf32> to vector<16x128xf32>
    %79 = vector.shape_cast %72 : vector<16x128xf32> to vector<1x16x128xf32>
    tpu.vector_store %arg9[%c0_32, %c0_33, %c0_34], %79 {strides = array<i32>} : memref<1x16x128xf32, #tpu.memory_space<vmem>>, vector<1x16x128xf32>,
    %c0_i32_35 = arith.constant 0 : i32
    %80 = arith.cmpi eq, %arg2, %c0_i32_35 : i32
    %81 = arith.extui %80 : i1 to i32
    %c0_i32_36 = arith.constant 0 : i32
    %82 = arith.cmpi ne, %81, %c0_i32_36 : i32
    scf.if %82 {
      %cst_37 = arith.constant 1.000000e+30 : f32
      %83 = vector.broadcast %cst_37 : f32 to vector<1x128xf32>
      %84 = arith.cmpf olt, %66, %83 : vector<1x128xf32>
      %85 = arith.extui %84 : vector<1x128xi1> to vector<1x128xi32>
      %86 = arith.sitofp %85 : vector<1x128xi32> to vector<1x128xf32>
      %c0_38 = arith.constant 0 : index
      %c0_39 = arith.constant 0 : index
      %c0_40 = arith.constant 0 : index
      %87 = vector.load %arg10[%c0_38, %c0_39, %c0_40] : memref<1x1x128xf32, #tpu.memory_space<vmem>>, vector<1x1x128xf32>
      %88 = vector.shape_cast %87 : vector<1x1x128xf32> to vector<1x128xf32>
      %89 = vector.shape_cast %86 : vector<1x128xf32> to vector<1x1x128xf32>
      tpu.vector_store %arg10[%c0_38, %c0_39, %c0_40], %89 {strides = array<i32>} : memref<1x1x128xf32, #tpu.memory_space<vmem>>, vector<1x1x128xf32>,
    } else {
    }
    return
  }
  func.func @transform_0(%arg0: i32, %arg1: i32, %arg2: i32) -> (i32, i32, i32) {
    %c0_i32 = arith.constant 0 : i32
    %c0_i32_0 = arith.constant 0 : i32
    return %arg0, %c0_i32, %arg1 : i32, i32, i32
  }
  func.func @transform_1(%arg0: i32, %arg1: i32, %arg2: i32) -> (i32, i32, i32) {
    %c0_i32 = arith.constant 0 : i32
    %c0_i32_0 = arith.constant 0 : i32
    return %arg0, %c0_i32, %arg1 : i32, i32, i32
  }
  func.func @transform_2(%arg0: i32, %arg1: i32, %arg2: i32) -> (i32, i32, i32) {
    %c0_i32 = arith.constant 0 : i32
    %c0_i32_0 = arith.constant 0 : i32
    return %arg0, %arg2, %c0_i32 : i32, i32, i32
  }
  func.func @transform_3(%arg0: i32, %arg1: i32, %arg2: i32) -> (i32, i32, i32) {
    %c0_i32 = arith.constant 0 : i32
    %c0_i32_0 = arith.constant 0 : i32
    return %arg0, %c0_i32, %arg2 : i32, i32, i32
  }
  func.func @transform_4(%arg0: i32, %arg1: i32, %arg2: i32) -> (i32, i32, i32) {
    %c0_i32 = arith.constant 0 : i32
    %c0_i32_0 = arith.constant 0 : i32
    return %arg0, %c0_i32, %arg2 : i32, i32, i32
  }
  func.func @transform_5(%arg0: i32, %arg1: i32, %arg2: i32) -> (i32, i32, i32) {
    %c0_i32 = arith.constant 0 : i32
    %c0_i32_0 = arith.constant 0 : i32
    return %arg0, %c0_i32, %arg1 : i32, i32, i32
  }
  func.func @transform_6(%arg0: i32, %arg1: i32, %arg2: i32) -> (i32, i32, i32) {
    %c0_i32 = arith.constant 0 : i32
    %c0_i32_0 = arith.constant 0 : i32
    return %arg0, %c0_i32, %arg1 : i32, i32, i32
  }
  func.func @transform_7(%arg0: i32, %arg1: i32, %arg2: i32) -> (i32, i32, i32) {
    %c0_i32 = arith.constant 0 : i32
    %c0_i32_0 = arith.constant 0 : i32
    return %arg0, %c0_i32, %arg1 : i32, i32, i32
  }
}

</mosaic_0001>

<bundles_post_ra>
// kernel: tpu_custom_call.1
= control target key start
LH: loop header
LB: loop body
LE: loop exit
PB: predicated region body
PF: predicated region fallthrough
CT: control target
= control target key end

     0   :  { %s5153_s0 = inlined_call_operand.vmem [shape: f32[2,3,128], index: 0, kind: input, shape index: {}]   ;;  %s5154_s1 = inlined_call_operand.vmem [shape: f32[2,1,128], index: 1, kind: input, shape index: {}]   ;;  %s5155_s2 = inlined_call_operand.vmem [shape: f32[2,128,3], index: 2, kind: input, shape index: {}]   ;;  %s5156_s3 = inlined_call_operand.vmem [shape: f32[2,3,128], index: 3, kind: input, shape index: {}]   ;;  %s5157_s4 = inlined_call_operand.vmem [shape: f32[2,16,128], index: 4, kind: input, shape index: {}]   ;;  %s5158_s5 = inlined_call_operand.vmem [shape: f32[2,3,128], index: 5, kind: output, shape index: {0}]   ;;  %s5159_s6 = inlined_call_operand.hbm [shape: f32[2,16,128], index: 6, kind: output, shape index: {1}]   ;;  %s5160_s7 = inlined_call_operand.hbm [shape: f32[2,1,128], index: 7, kind: output, shape index: {2}]  }
   0x1   :  { %5198 = sst [smem:[#allocation21_spill]] %s5153_s0 }
   0x2   :  { %5199 = sst [smem:[#allocation22_spill]] %s5154_s1 }
   0x3   :  { %13 = vsyncpa [#allocation4], 0 }
   0x4   :  { %15 = vsyncpa [#allocation4 + $0x1], 0 }
   0x5   :  { %16 = vsyncpa [#allocation6], 0 }
   0x6   :  { %18 = vsyncpa [#allocation6 + $0x1], 0  ;;  %s3612_s24 = smov 0   ;;  %s3614_s25 = smov 0  }
   0x7   :  { %s3616_s26 = smov 0   ;;  %s3618_s27 = smov 0  }
   0x8   :  { %s3620_s28 = smov 0   ;;  %s3622_s29 = smov 0  }
   0x9 LB: > { %s2605_s30 = sadd.s32 4294967295, %s3559_s29   ;;  %s2606_s8 = sadd.s32 4294967294, %s3559_s29   ;;  %s3559_s29 = sphi %s3622_s29, %s24_s29   ;;  %s3555_s28 = sphi %s3620_s28, %s5278_s28   ;;  %s3551_s27 = sphi %s3618_s27, %s5277_s27   ;;  %s3547_s26 = sphi %s3616_s26, %s5276_s26   ;;  %s3543_s25 = sphi %s3614_s25, %s5275_s25   ;;  %s3539_s24 = sphi %s3612_s24, %s5274_s24  }
   0xa   : > { %s43_s9 = sadd.s32 1, %s3555_s28  ;;  %s220_s10 = sadd.s32 1, %s3547_s26 }
   0xb   : > { %p45_p0 = scmp.ge.s32.totalorder %s43_s9, 2  ;;  %p230_p1 = scmp.ne.s32.totalorder %s3547_s26, %s3543_s25 }
   0xc   : > { %p231_p2 = scmp.eq.s32.totalorder %s2605_s30, 1  ;;  %p236_p3 = scmp.ne.s32.totalorder %s3543_s25, %s3539_s24 }
   0xd   : > { %s5280_s9 = smov (%p45_p0, %s43_s9), 0  ;;  %p237_p5 = scmp.eq.s32.totalorder %s2606_s8, 1 }
   0xe   : > { %p3652_p4 = por %p231_p2, %p230_p1  ;;  %s215_s12 = ssub.s32 %s3555_s28, %s5280_s9 }
   0xf   : > { %p2609_p6 = scmp.ge.s32.totalorder %s3559_s29, 1  ;;  %p218_p7 = scmp.eq.s32.totalorder %s215_s12, 0 }
  0x10   : > { %p3659_p8 = por %p237_p5, %p236_p3  ;;  %p336_p9 = scmp.lt.s32.totalorder %s3559_s29, 3 }
  0x11   : > { %s3665_s14 = scalar_select %p218_p7, %s3547_s26, %s220_s10  }
  0x12   : > { %p337_p10 = pnand %p2609_p6, %p336_p9 }
  0x14   : > { %340 = sbr.rel (%p337_p10) target bundleno = 746 (0x2ea), region = 40 }
  0x19   : > { %p411_p11 = scmp.lt.s32.totalorder %s3551_s27, 1  ;;  %v5165_v0 = vmov 0   ;;  %v3562_v10 = vmov 1   ;;  %v5166_v17 = vmov 2   ;;  %v485_v19 = vlaneseq  ;;  %s5203_s0 = sld [smem:[#allocation21_spill]] }
  0x1a   : > { %3440 = vset.pattern.permute.xlu1 %v5165_v0  ;;  %3439 = vset.pattern.permute.xlu0 %v5165_v0  ;;  %v3564_v42 = vmov 0.0   ;;  %v3565_v54 = vmov 1e+30   ;;  %vm5161_vm0 = vmmov 0   ;;  %s5204_s1 = sld [smem:[#allocation22_spill]]  ;;  %s4014_s12 = sand.u32 1, %s3543_s25  }
  0x1b   : > { %s3671_s15 = scalar_select %p411_p11, %s3551_s27, 1  ;;  %v3705_v22 = vshrl.u32 %v485_v19, 7  ;;  %2950 = vmatprep.subr.mxu0 %v3564_v42  ;;  %2985 = vmatprep.subr.mxu1 %v3564_v42  ;;  %463 = vst [vmem:[#allocation2] sm:$0x1] %v3565_v54 }
  0x1c   : > { %2982 = vmatprep.mubr.msk.f32.mxu0 %vm5161_vm0, %v3564_v42  ;;  %3017 = vmatprep.mubr.msk.f32.mxu1 %vm5161_vm0, %v3564_v42  ;;  %s2734_s30 = sshll.u32 %s3551_s27, 4 }
  0x1d   : > { %s2737_s16 = sshll.u32 %s3671_s15, 7  ;;  %s3703_s20 = sshll.u32 %s3671_s15, 2  ;;  %5202 = vst [vmem:[#allocation9_spill] sm:$0xff] %v3705_v22  ;;  %v5164_v25 = vsub.s32 0, %v3705_v22  ;;  %v688_v29 = vsub.s32 1, %v3705_v22 }
  0x1e   : > { %s3677_s19 = scalar_lea.vmem %s5155_s2, %s2737_s16  ;;  %s410_s16 = scalar_lea.vmem [#allocation5], %s4014_s12 }
  0x1f   : > { %v508_v1 = vld [vmem:[%s3677_s19 + $0x10] sm:$0xff]  ;;  %v506_v2 = vld [vmem:[%s3677_s19] sm:$0xff]  ;;  %v509_v3 = vld [vmem:[%s3677_s19 + $0x18] sm:$0xff]  ;;  %s417_s23 = scalar_lea.vmem %s5203_s0, %s3703_s20  ;;  %s2738_s17 = sshll.u32 %s3671_s15, 4 }
  0x20   : > { %534 = vperm.xlu1 %3440, %v508_v1   ;;  %524 = vperm.xlu0 %3439, %v506_v2   ;;  %v507_v4 = vld [vmem:[%s3677_s19 + $0x8] sm:$0xff]  ;;  %v510_v6 = vld [vmem:[%s3677_s19 + $0x20] sm:$0xff]  ;;  %v513_v7 = vld [vmem:[%s3677_s19 + $0x38] sm:$0xff]  ;;  %s423_s10 = scalar_lea.vmem %s5204_s1, %s3671_s15  ;;  %s448_s21 = scalar_lea.vmem %s5157_s4, %s2738_s17 }
  0x21   : > { %v511_v5 = vld [vmem:[%s3677_s19 + $0x28] sm:$0xff]  ;;  %v512_v8 = vld [vmem:[%s3677_s19 + $0x30] sm:$0xff]  ;;  %v518_v11 = vld [vmem:[%s3677_s19 + $0x60] sm:$0xff]  ;;  %s2407_s8 = sshll.u32 %s410_s16, 4  ;;  %s2405_s18 = scalar_lea.hbm %s5160_s7, %s2734_s30  ;;  %s2408_s8 = int_to_ptr.vmem [resolvable:$true] %s2407_s8 }
  0x22   : > { %v515_v9 = vld [vmem:[%s3677_s19 + $0x48] sm:$0xff]  ;;  %v521_v12 = vld [vmem:[%s3677_s19 + $0x78] sm:$0xff]  ;;  %v514_v13 = vld [vmem:[%s3677_s19 + $0x40] sm:$0xff]  ;;  %s3568_s15 = smov [#allocation5]  }
  0x23   : > { %v516_v14 = vld [vmem:[%s3677_s19 + $0x50] sm:$0xff]  ;;  %v517_v15 = vld [vmem:[%s3677_s19 + $0x58] sm:$0xff]  ;;  %v519_v16 = vld [vmem:[%s3677_s19 + $0x68] sm:$0xff]  ;;  %s3457_s22 = sshll.u32 %s3568_s15, 4  ;;  %s3458_s22 = int_to_ptr.vmem [resolvable:$false] %s3457_s22 }
  0x24   : > { %539 = vperm.xlu1 %3440, %v509_v3   ;;  %529 = vperm.xlu0 %3439, %v507_v4   ;;  %v520_v18 = vld [vmem:[%s3677_s19 + $0x70] sm:$0xff]  ;;  %v456_v28 = vld [vmem:[%s417_s23] sm:$0x7]  ;;  %s4166_s23 = scalar_lea.vmem %s5156_s3, %s3703_s20  ;;  %s2374_s19 = scalar_lea.sflag [#allocation6], %s4014_s12 }
  0x25   : > { %v3715_v30 = vrot.slane %v456_v28, %v5164_v25  ;;  %v3717_v33 = vrot.slane %v456_v28, %v688_v29  ;;  %p3460_p1 = scmp.lt.s32.totalorder %s2408_s8, %s3458_s22 }
  0x28   : > { %549 = vperm.xlu1 %3440, %v511_v5   ;;  %544 = vperm.xlu0 %3439, %v510_v6  }
  0x2c   : > { %559 = vperm.xlu1 %3440, %v513_v7   ;;  %554 = vperm.xlu0 %3439, %v512_v8  }
  0x30   : > { %3441 = vset.pattern.permute.xlu1 %v3562_v10  ;;  %569 = vperm.xlu0 %3439, %v515_v9  }
  0x31   : > { %627 = vperm.xlu1 %3441, %v507_v4  }
  0x34   : > { %584 = vperm.xlu0 %3439, %v518_v11  }
  0x35   : > { %631 = vperm.xlu1 %3441, %v508_v1  }
  0x38   : > { %599 = vperm.xlu0 %3439, %v521_v12  }
  0x39   : > { %639 = vperm.xlu1 %3441, %v510_v6  }
  0x3c   : > { %3446 = vset.pattern.permute.xlu0 %v3562_v10 }
  0x3d   : > { %647 = vperm.xlu1 %3441, %v512_v8   ;;  %623 = vperm.xlu0 %3446, %v506_v2  }
  0x41   : > { %3442 = vset.pattern.permute.xlu1 %v5165_v0  ;;  %635 = vperm.xlu0 %3446, %v509_v3  }
  0x42   : > { %564 = vperm.xlu1 %3442, %v514_v13  }
  0x45   : > { %643 = vperm.xlu0 %3446, %v511_v5  }
  0x46   : > { %574 = vperm.xlu1 %3442, %v516_v14  }
  0x49   : > { %651 = vperm.xlu0 %3446, %v513_v7  }
  0x4a   : > { %579 = vperm.xlu1 %3442, %v517_v15  }
  0x4d   : > { %655 = vperm.xlu0 %3446, %v514_v13  }
  0x4e   : > { %3443 = vset.pattern.permute.xlu1 %v3562_v10 }
  0x4f   : > { %659 = vperm.xlu1 %3443, %v515_v9  }
  0x51   : > { %667 = vperm.xlu0 %3446, %v517_v15  }
  0x53   : > { %663 = vperm.xlu1 %3443, %v516_v14  }
  0x55   : > { %675 = vperm.xlu0 %3446, %v519_v16  }
  0x57   : > { %3444 = vset.pattern.permute.xlu1 %v5166_v17 }
  0x58   : > { %707 = vperm.xlu1 %3444, %v506_v2  }
  0x59   : > { %3448 = vset.pattern.permute.xlu0 %v5166_v17 }
  0x5a   : > { %711 = vperm.xlu0 %3448, %v507_v4  }
  0x5c   : > { %715 = vperm.xlu1 %3444, %v508_v1  }
  0x5e   : > { %723 = vperm.xlu0 %3448, %v510_v6  }
  0x60   : > { %719 = vperm.xlu1 %3444, %v509_v3  }
  0x62   : > { %731 = vperm.xlu0 %3448, %v512_v8  }
  0x64   : > { %727 = vperm.xlu1 %3444, %v511_v5   ;;  %v772_v5 = vsub.s32 2, %v3705_v22 }
  0x66   : > { %739 = vperm.xlu0 %3448, %v514_v13   ;;  %v3750_v8 = vrot.slane %v456_v28, %v772_v5 }
  0x68   : > { %735 = vperm.xlu1 %3444, %v513_v7  }
  0x6a   : > { %751 = vperm.xlu0 %3448, %v517_v15  }
  0x6c   : > { %3445 = vset.pattern.permute.xlu1 %v5165_v0 }
  0x6d   : > { %589 = vperm.xlu1 %3445, %v519_v16  }
  0x6e   : > { %759 = vperm.xlu0 %3448, %v519_v16  }
  0x71   : > { %594 = vperm.xlu1 %3445, %v520_v18  }
  0x72   : > { %767 = vperm.xlu0 %3448, %v521_v12  }
  0x75   : > { %3447 = vset.pattern.permute.xlu1 %v3562_v10 }
  0x76   : > { %671 = vperm.xlu1 %3447, %v518_v11   ;;  %3451 = vset.pattern.permute.xlu0 %v5165_v0 }
  0x7a   : > { %679 = vperm.xlu1 %3447, %v520_v18  }
  0x7e   : > { %683 = vperm.xlu1 %3447, %v521_v12  }
  0x82   : > { %3449 = vset.pattern.permute.xlu1 %v5166_v17 }
  0x83   : > { %743 = vperm.xlu1 %3449, %v515_v9  }
  0x87   : > { %747 = vperm.xlu1 %3449, %v516_v14  }
  0x8b   : > { %755 = vperm.xlu1 %3449, %v518_v11  }
  0x8f   : > { %763 = vperm.xlu1 %3449, %v520_v18  }
  0x93   : > { %3450 = vset.pattern.permute.xlu1 %v5165_v0 }
  0x9b   : > { %v535_v20 = vpop.permute.xlu1 %534  ;;  %v525_v21 = vpop.permute.xlu0 %524 }
  0x9c   : > { %v608_v39 = vsub.f32 %v535_v20, %v3715_v30  ;;  %v606_v10 = vsub.f32 %v525_v21, %v3715_v30 }
  0x9e   : > { %v792_v47 = vmul.f32 %v608_v39, %v608_v39  ;;  %v790_v19 = vmul.f32 %v606_v10, %v606_v10 }
  0x9f   : > { %v540_v23 = vpop.permute.xlu1 %539  ;;  %v530_v24 = vpop.permute.xlu0 %529 }
  0xa0   : > { %v607_v34 = vsub.f32 %v530_v24, %v3715_v30  ;;  %v609_v13 = vsub.f32 %v540_v23, %v3715_v30 }
  0xa2   : > { %v791_v37 = vmul.f32 %v607_v34, %v607_v34  ;;  %v793_v29 = vmul.f32 %v609_v13, %v609_v13 }
  0xa3   : > { %v550_v26 = vpop.permute.xlu1 %549  ;;  %v545_v27 = vpop.permute.xlu0 %544 }
  0xa4   : > { %v610_v44 = vsub.f32 %v545_v27, %v3715_v30  ;;  %v611_v20 = vsub.f32 %v550_v26, %v3715_v30 }
  0xa6   : > { %v794_v51 = vmul.f32 %v610_v44, %v610_v44  ;;  %v795_v26 = vmul.f32 %v611_v20, %v611_v20 }
  0xa7   : > { %v560_v31 = vpop.permute.xlu1 %559  ;;  %v555_v32 = vpop.permute.xlu0 %554 }
  0xa8   : > { %v612_v15 = vsub.f32 %v555_v32, %v3715_v30  ;;  %v613_v34 = vsub.f32 %v560_v31, %v3715_v30 }
  0xab   : > { %v3720_v35 = vpop.permute.xlu0 %569 }
  0xac   : > { %v628_v36 = vpop.permute.xlu1 %627 }
  0xad   : > { %v691_v38 = vsub.f32 %v628_v36, %v3717_v33 }
  0xaf   : > { %v807_v40 = vmul.f32 %v691_v38, %v691_v38  ;;  %v3724_v41 = vpop.permute.xlu0 %584 }
  0xb0   : > { %v632_v43 = vpop.permute.xlu1 %631 }
  0xb1   : > { %v3729_v45 = vadd.f32 %v807_v40, %v791_v37  ;;  %v692_v46 = vsub.f32 %v632_v43, %v3717_v33  ;;  %v796_v37 = vmul.f32 %v612_v15, %v612_v15 }
  0xb3   : > { %v808_v48 = vmul.f32 %v692_v46, %v692_v46  ;;  %v3732_v49 = vpop.permute.xlu0 %599 }
  0xb4   : > { %v640_v50 = vpop.permute.xlu1 %639 }
  0xb5   : > { %v3734_v52 = vadd.f32 %v808_v48, %v792_v47  ;;  %v694_v53 = vsub.f32 %v640_v50, %v3717_v33 }
  0xb7   : > { %v810_v55 = vmul.f32 %v694_v53, %v694_v53  ;;  %v797_v53 = vmul.f32 %v613_v34, %v613_v34 }
  0xb8   : > { %v648_v56 = vpop.permute.xlu1 %647  ;;  %v624_v57 = vpop.permute.xlu0 %623 }
  0xb9   : > { %v826_v58 = vadd.f32 %v810_v55, %v794_v51  ;;  %v690_v11 = vsub.f32 %v624_v57, %v3717_v33  ;;  %v696_v16 = vsub.f32 %v648_v56, %v3717_v33 }
  0xbb   : > { %v806_v24 = vmul.f32 %v690_v11, %v690_v11  ;;  %v812_v32 = vmul.f32 %v696_v16, %v696_v16 }
  0xbc   : > { %v636_v59 = vpop.permute.xlu0 %635 }
  0xbd   : > { %v565_v60 = vpop.permute.xlu1 %564  ;;  %v822_v43 = vadd.f32 %v806_v24, %v790_v19  ;;  %v693_v44 = vsub.f32 %v636_v59, %v3717_v33  ;;  %v828_v57 = vadd.f32 %v812_v32, %v796_v37 }
  0xbe   : > { %v614_v47 = vsub.f32 %v565_v60, %v3715_v30 }
  0xc0   : > { %v644_v61 = vpop.permute.xlu0 %643  ;;  %v798_v11 = vmul.f32 %v614_v47, %v614_v47 }
  0xc1   : > { %v3737_v62 = vpop.permute.xlu1 %574  ;;  %v695_v27 = vsub.f32 %v644_v61, %v3717_v33 }
  0xc3   : > { %v811_v48 = vmul.f32 %v695_v27, %v695_v27 }
  0xc4   : > { %v652_v63 = vpop.permute.xlu0 %651 }
  0xc5   : > { %v3739_v1 = vpop.permute.xlu1 %579  ;;  %v697_v31 = vsub.f32 %v652_v63, %v3717_v33 }
  0xc7   : > { %v813_v13 = vmul.f32 %v697_v31, %v697_v31 }
  0xc8   : > { %v656_v2 = vpop.permute.xlu0 %655 }
  0xc9   : > { %v698_v38 = vsub.f32 %v656_v2, %v3717_v33 }
  0xca   : > { %v3741_v3 = vpop.permute.xlu1 %659 }
  0xcb   : > { %v814_v61 = vmul.f32 %v698_v38, %v698_v38  ;;  %v699_v31 = vsub.f32 %v3741_v3, %v3717_v33 }
  0xcc   : > { %v3743_v4 = vpop.permute.xlu0 %667 }
  0xcd   : > { %v830_v19 = vadd.f32 %v814_v61, %v798_v11  ;;  %v621_v61 = vsub.f32 %v3732_v49, %v3715_v30  ;;  %v617_v11 = vsub.f32 %v3739_v1, %v3715_v30 }
  0xce   : > { %v3746_v6 = vpop.permute.xlu1 %663 }
  0xd0   : > { %v3748_v7 = vpop.permute.xlu0 %675 }
  0xd3   : > { %v708_v9 = vpop.permute.xlu1 %707 }
  0xd4   : > { %v774_v14 = vsub.f32 %v708_v9, %v3750_v8  ;;  %v809_v9 = vmul.f32 %v693_v44, %v693_v44 }
  0xd5   : > { %v712_v12 = vpop.permute.xlu0 %711 }
  0xd6   : > { %v838_v23 = vmul.f32 %v774_v14, %v774_v14  ;;  %v775_v39 = vsub.f32 %v712_v12, %v3750_v8  ;;  %v827_v12 = vadd.f32 %v811_v48, %v795_v26 }
  0xd7   : > { %v716_v18 = vpop.permute.xlu1 %715 }
  0xd8   : > { %v776_v21 = vsub.f32 %v716_v18, %v3750_v8  ;;  %v3768_v54 = vadd.f32 %v838_v23, %v822_v43  ;;  %v839_v2 = vmul.f32 %v775_v39, %v775_v39  ;;  %v825_v23 = vadd.f32 %v809_v9, %v793_v29 }
  0xd9   : > { %v724_v28 = vpop.permute.xlu0 %723 }
  0xda   : > { %v778_v36 = vsub.f32 %v724_v28, %v3750_v8  ;;  %v840_v50 = vmul.f32 %v776_v21, %v776_v21  ;;  %v3784_v20 = vadd.f32 %v839_v2, %v3729_v45  ;;  %v829_v45 = vadd.f32 %v813_v13, %v797_v53 }
  0xdb   : > { %v720_v40 = vpop.permute.xlu1 %719  ;;  %v618_v53 = vsub.f32 %v3724_v41, %v3715_v30  ;;  %v815_v2 = vmul.f32 %v699_v31, %v699_v31 }
  0xdc   : > { %v842_v46 = vmul.f32 %v778_v36, %v778_v36  ;;  %v777_v59 = vsub.f32 %v720_v40, %v3750_v8 }
  0xdd   : > { %v732_v51 = vpop.permute.xlu0 %731 }
  0xde   : > { %v3770_v55 = vadd.f32 %v842_v46, %v826_v58  ;;  %v780_v56 = vsub.f32 %v732_v51, %v3750_v8  ;;  %v3778_v58 = vadd.f32 %v840_v50, %v3734_v52  ;;  %v841_v24 = vmul.f32 %v777_v59, %v777_v59 }
  0xdf   : > { %v728_v5 = vpop.permute.xlu1 %727  ;;  %v615_v50 = vsub.f32 %v3720_v35, %v3715_v30  ;;  %v700_v51 = vsub.f32 %v3746_v6, %v3717_v33  ;;  %v701_v6 = vsub.f32 %v3743_v4, %v3717_v33  ;;  %v805_v4 = vmul.f32 %v621_v61, %v621_v61 }
  0xe0   : > { %v870_v60 = vmin.f32 %v3768_v54, %v3770_v55  ;;  %v844_v63 = vmul.f32 %v780_v56, %v780_v56  ;;  %v779_v10 = vsub.f32 %v728_v5, %v3750_v8  ;;  %v3799_v38 = vadd.f32 %v841_v24, %v825_v23 }
  0xe1   : > { %v740_v14 = vpop.permute.xlu0 %739  ;;  %v616_v56 = vsub.f32 %v3737_v62, %v3715_v30  ;;  %v799_v35 = vmul.f32 %v615_v50, %v615_v50  ;;  %v816_v9 = vmul.f32 %v700_v51, %v700_v51  ;;  %v703_v62 = vsub.f32 %v3748_v7, %v3717_v33 }
  0xe2   : > { %v3780_v15 = vadd.f32 %v844_v63, %v828_v57  ;;  %v843_v16 = vmul.f32 %v779_v10, %v779_v10  ;;  %v782_v18 = vsub.f32 %v740_v14, %v3750_v8  ;;  %v817_v24 = vmul.f32 %v701_v6, %v701_v6 }
  0xe3   : > { %v736_v27 = vpop.permute.xlu1 %735  ;;  %v800_v10 = vmul.f32 %v616_v56, %v616_v56  ;;  %v819_v23 = vmul.f32 %v703_v62, %v703_v62 }
  0xe4   : > { %v872_v52 = vmin.f32 %v3778_v58, %v3780_v15  ;;  %v3792_v21 = vadd.f32 %v843_v16, %v827_v12  ;;  %v846_v28 = vmul.f32 %v782_v18, %v782_v18  ;;  %v781_v34 = vsub.f32 %v736_v27, %v3750_v8 }
  0xe5   : > { %v752_v47 = vpop.permute.xlu0 %751  ;;  %v831_v16 = vadd.f32 %v815_v2, %v799_v35  ;;  %v832_v27 = vadd.f32 %v816_v9, %v800_v10 }
  0xe6   : > { %v871_v36 = vmin.f32 %v3784_v20, %v3792_v21  ;;  %v3797_v37 = vadd.f32 %v846_v28, %v830_v19  ;;  %v845_v32 = vmul.f32 %v781_v34, %v781_v34  ;;  %v785_v12 = vsub.f32 %v752_v47, %v3750_v8 }
  0xe8   : > { %v3802_v39 = vmin.f32 %v870_v60, %v3797_v37  ;;  %v3804_v40 = vadd.f32 %v845_v32, %v829_v45  ;;  %v590_v26 = vpop.permute.xlu1 %589  ;;  %v802_v60 = vmul.f32 %v618_v53, %v618_v53 }
  0xe9   : > { %v619_v59 = vsub.f32 %v590_v26, %v3715_v30  ;;  %v760_v3 = vpop.permute.xlu0 %759  ;;  %v801_v26 = vmul.f32 %v617_v11, %v617_v11 }
  0xea   : > { %v873_v43 = vmin.f32 %v3799_v38, %v3804_v40  ;;  %v787_v13 = vsub.f32 %v760_v3, %v3750_v8 }
  0xeb   : > { %v803_v18 = vmul.f32 %v619_v59, %v619_v59 }
  0xec   : > { %v595_v44 = vpop.permute.xlu1 %594  ;;  %v851_v47 = vmul.f32 %v787_v13, %v787_v13 }
  0xed   : > { %v768_v28 = vpop.permute.xlu0 %767  ;;  %v835_v50 = vadd.f32 %v819_v23, %v803_v18  ;;  %v3885_v23 = vadd.s32 56, %v3705_v22 }
  0xee   : > { %v789_v51 = vsub.f32 %v768_v28, %v3750_v8  ;;  %v3879_v28 = vadd.s32 40, %v3705_v22 }
  0xef   : > { %v3851_v35 = vadd.f32 %v851_v47, %v835_v50  ;;  %v3912_v50 = vadd.s32 112, %v3705_v22 }
  0xf0   : > { %v853_v6 = vmul.f32 %v789_v51, %v789_v51  ;;  %v3915_v51 = vadd.s32 120, %v3705_v22 }
  0xf1   : > { %v672_v29 = vpop.permute.xlu1 %671 }
  0xf2   : > { %v702_v41 = vsub.f32 %v672_v29, %v3717_v33  ;;  %v849_v29 = vmul.f32 %v785_v12, %v785_v12 }
  0xf4   : > { %v818_v7 = vmul.f32 %v702_v41, %v702_v41 }
  0xf5   : > { %v680_v46 = vpop.permute.xlu1 %679 }
  0xf6   : > { %v704_v34 = vsub.f32 %v680_v46, %v3717_v33 }
  0xf8   : > { %v820_v46 = vmul.f32 %v704_v34, %v704_v34  ;;  %v3882_v34 = vadd.s32 48, %v3705_v22 }
  0xf9   : > { %v684_v48 = vpop.permute.xlu1 %683 }
  0xfa   : > { %v705_v63 = vsub.f32 %v684_v48, %v3717_v33  ;;  %v620_v48 = vsub.f32 %v595_v44, %v3715_v30  ;;  %v834_v33 = vadd.f32 %v818_v7, %v802_v60 }
  0xfc   : > { %v821_v45 = vmul.f32 %v705_v63, %v705_v63  ;;  %v804_v3 = vmul.f32 %v620_v48, %v620_v48  ;;  %v3906_v48 = vadd.s32 96, %v3705_v22 }
  0xfe   : > { %v744_v57 = vpop.permute.xlu1 %743  ;;  %v837_v61 = vadd.f32 %v821_v45, %v805_v4  ;;  %v836_v60 = vadd.f32 %v820_v46, %v804_v3  ;;  %v3888_v45 = vadd.s32 64, %v3705_v22 }
  0xff   : > { %v783_v5 = vsub.f32 %v744_v57, %v3750_v8  ;;  %v833_v57 = vadd.f32 %v817_v24, %v801_v26  ;;  %v3870_v24 = vadd.s32 16, %v3705_v22  ;;  %v3898_v26 = vadd.s32 80, %v3705_v22 }
 0x100   : > { %v3856_v62 = vadd.f32 %v853_v6, %v837_v61 }
 0x101   : > { %v847_v49 = vmul.f32 %v783_v5, %v783_v5  ;;  %v3849_v59 = vadd.f32 %v849_v29, %v833_v57  ;;  %v3901_v29 = vadd.s32 88, %v3705_v22 }
 0x102   : > { %v748_v14 = vpop.permute.xlu1 %747 }
 0x103   : > { %v784_v19 = vsub.f32 %v748_v14, %v3750_v8  ;;  %v3834_v32 = vadd.f32 %v847_v49, %v831_v16  ;;  %v877_v49 = vmin.f32 %v873_v43, %v3849_v59  ;;  %v3873_v43 = vadd.s32 24, %v3705_v22 }
 0x105   : > { %v848_v1 = vmul.f32 %v784_v19, %v784_v19  ;;  %v875_v2 = vmin.f32 %v871_v36, %v3834_v32  ;;  %v881_v12 = vmin.f32 %v877_v49, %v3856_v62 }
 0x106   : > { %v756_v31 = vpop.permute.xlu1 %755 }
 0x107   : > { %v3838_v53 = vadd.f32 %v848_v1, %v832_v27  ;;  %v786_v56 = vsub.f32 %v756_v31, %v3750_v8  ;;  %v879_v36 = vmin.f32 %v875_v2, %v3851_v35  ;;  %v3876_v27 = vadd.s32 32, %v3705_v22 }
 0x108   : > { %v3895_v1 = vadd.s32 72, %v3705_v22  ;;  %v3909_v31 = vadd.s32 104, %v3705_v22 }
 0x109   : > { %v876_v30 = vmin.f32 %v872_v52, %v3838_v53  ;;  %v850_v44 = vmul.f32 %v786_v56, %v786_v56  ;;  %v457_v56 = vld [vmem:[%s423_s10] sm:$0x1] }
 0x10a   : > { %v764_v5 = vpop.permute.xlu1 %763  ;;  %vm458_vm9 = vcmp.gt.f32.partialorder %v457_v56, 0.5 }
 0x10b   : > { %v3853_v9 = vadd.f32 %v850_v44, %v834_v33  ;;  %v788_v41 = vsub.f32 %v764_v5, %v3750_v8 }
 0x10d   : > { %v878_v52 = vmin.f32 %v3802_v39, %v3853_v9  ;;  %v852_v63 = vmul.f32 %v788_v41, %v788_v41  ;;  %v3867_v39 = vadd.s32 8, %v3705_v22  ;;  %v4011_v41 = vld [vmem:[#allocation2] sm:$0x1] }
 0x10e   : > { %5206 = vst [vmem:[#allocation10_spill] sm:$0xff] %v4011_v41 }
 0x10f   : > { %v882_v10 = vmin.f32 %v878_v52, %v879_v36  ;;  %v868_v11 = vadd.f32 %v852_v63, %v836_v60 }
 0x111   : > { %v880_v13 = vmin.f32 %v876_v30, %v868_v11 }
 0x113   : > { %v883_v8 = vmin.f32 %v880_v13, %v881_v12 }
 0x115   : > { %v884_v14 = vmin.f32 %v882_v10, %v883_v8 }
 0x117   : > { %v885_v4 = vrot.slane %v884_v14, 4 }
 0x119   : > { %v886_v16 = vmin.f32 %v884_v14, %v885_v4 }
 0x11b   : > { %v887_v18 = vrot.slane %v886_v16, 2 }
 0x11d   : > { %v888_v19 = vmin.f32 %v886_v16, %v887_v18 }
 0x11f   : > { %v889_v7 = vrot.slane %v888_v19, 1 }
 0x121   : > { %v3903_v47 = vmin.f32 %v888_v19, %v889_v7 }
 0x123   : > { %vm891_vm1 = vcmp.eq.f32.partialorder %v3768_v54, %v3903_v47  ;;  %vm892_vm2 = vcmp.eq.f32.partialorder %v3784_v20, %v3903_v47  ;;  %vm893_vm3 = vcmp.eq.f32.partialorder %v3778_v58, %v3903_v47  ;;  %vm894_vm4 = vcmp.eq.f32.partialorder %v3799_v38, %v3903_v47 }
 0x124   : > { %vm895_vm5 = vcmp.eq.f32.partialorder %v3770_v55, %v3903_v47  ;;  %vm896_vm6 = vcmp.eq.f32.partialorder %v3792_v21, %v3903_v47  ;;  %vm897_vm7 = vcmp.eq.f32.partialorder %v3780_v15, %v3903_v47  ;;  %vm898_vm8 = vcmp.eq.f32.partialorder %v3804_v40, %v3903_v47 }
 0x125   : > { %vm900_vm10 = vcmp.eq.f32.partialorder %v3834_v32, %v3903_v47  ;;  %vm901_vm11 = vcmp.eq.f32.partialorder %v3838_v53, %v3903_v47  ;;  %vm902_vm12 = vcmp.eq.f32.partialorder %v3849_v59, %v3903_v47  ;;  %vm903_vm13 = vcmp.eq.f32.partialorder %v3853_v9, %v3903_v47 }
 0x126   : > { %vm904_vm14 = vcmp.eq.f32.partialorder %v3851_v35, %v3903_v47  ;;  %vm905_vm15 = vcmp.eq.f32.partialorder %v868_v11, %v3903_v47  ;;  %vm906_vm0 = vcmp.eq.f32.partialorder %v3856_v62, %v3903_v47  ;;  %v907_v57 = vsel %vm891_vm1, %v3705_v22, 128 }
 0x127   : > { %v908_v33 = vsel %vm892_vm2, %v3867_v39, 128  ;;  %v909_v46 = vsel %vm893_vm3, %v3870_v24, 128  ;;  %v910_v61 = vsel %vm894_vm4, %v3873_v43, 128  ;;  %v911_v54 = vsel %vm895_vm5, %v3876_v27, 128 }
 0x128   : > { %v912_v20 = vsel %vm896_vm6, %v3879_v28, 128  ;;  %v913_v58 = vsel %vm897_vm7, %v3882_v34, 128  ;;  %v914_v38 = vsel %vm898_vm8, %v3885_v23, 128  ;;  %vm5205_vm1 = vcmp.eq.f32.partialorder %v3797_v37, %v3903_v47 }
 0x129   : > { %v915_v55 = vsel %vm5205_vm1, %v3888_v45, 128  ;;  %v916_v21 = vsel %vm900_vm10, %v3895_v1, 128  ;;  %v917_v15 = vsel %vm901_vm11, %v3898_v26, 128  ;;  %v918_v40 = vsel %vm902_vm12, %v3901_v29, 128 }
 0x12a   : > { %v919_v37 = vsel %vm903_vm13, %v3906_v48, 128  ;;  %v920_v32 = vsel %vm904_vm14, %v3909_v31, 128  ;;  %v921_v53 = vsel %vm905_vm15, %v3912_v50, 128  ;;  %v922_v2 = vsel %vm906_vm0, %v3915_v51, 128 }
 0x12b   : > { %vm923_vm2 = vcmp.lt.s32.totalorder %v907_v57, %v911_v54  ;;  %vm925_vm3 = vcmp.lt.s32.totalorder %v908_v33, %v912_v20  ;;  %vm927_vm4 = vcmp.lt.s32.totalorder %v909_v46, %v913_v58  ;;  %vm929_vm5 = vcmp.lt.s32.totalorder %v910_v61, %v914_v38 }
 0x12c   : > { %v924_v30 = vsel %vm923_vm2, %v907_v57, %v911_v54  ;;  %v926_v44 = vsel %vm925_vm3, %v908_v33, %v912_v20  ;;  %v928_v59 = vsel %vm927_vm4, %v909_v46, %v913_v58  ;;  %v930_v3 = vsel %vm929_vm5, %v910_v61, %v914_v38 }
 0x12d   : > { %vm931_vm6 = vcmp.lt.s32.totalorder %v924_v30, %v915_v55  ;;  %vm933_vm7 = vcmp.lt.s32.totalorder %v926_v44, %v916_v21  ;;  %vm935_vm8 = vcmp.lt.s32.totalorder %v928_v59, %v917_v15  ;;  %vm937_vm10 = vcmp.lt.s32.totalorder %v930_v3, %v918_v40 }
 0x12e   : > { %v932_v5 = vsel %vm931_vm6, %v924_v30, %v915_v55  ;;  %v934_v35 = vsel %vm933_vm7, %v926_v44, %v916_v21  ;;  %v936_v6 = vsel %vm935_vm8, %v928_v59, %v917_v15  ;;  %v938_v9 = vsel %vm937_vm10, %v930_v3, %v918_v40  ;;  %v4146_v44 = vld [vmem:[%s448_s21] sm:$0xff] }
 0x12f   : > { %vm939_vm11 = vcmp.lt.s32.totalorder %v932_v5, %v919_v37  ;;  %vm941_vm12 = vcmp.lt.s32.totalorder %v934_v35, %v920_v32  ;;  %vm943_vm0 = vcmp.lt.s32.totalorder %v936_v6, %v921_v53  ;;  %vm945_vm13 = vcmp.lt.s32.totalorder %v938_v9, %v922_v2  ;;  %475 = vperm.xlu1 %3450, %v4146_v44  }
 0x130   : > { %v940_v60 = vsel %vm939_vm11, %v932_v5, %v919_v37  ;;  %v942_v62 = vsel %vm941_vm12, %v934_v35, %v920_v32  ;;  %v944_v36 = vsel %vm943_vm0, %v936_v6, %v921_v53  ;;  %v946_v52 = vsel %vm945_vm13, %v938_v9, %v922_v2  ;;  %v4168_v35 = vld [vmem:[%s448_s21 + $0x8] sm:$0xff]  ;;  %s3453_s21 = scalar_lea.vmem %s2408_s8, 16 }
 0x131   : > { %vm947_vm14 = vcmp.lt.s32.totalorder %v940_v60, %v942_v62  ;;  %vm949_vm15 = vcmp.lt.s32.totalorder %v944_v36, %v946_v52  ;;  %v4018_v63 = vsel %vm458_vm9, %v3903_v47, 1e+37  ;;  %v5210_v47 = vmov 0  ;;  %5226 = vst [vmem:[#allocation12_spill] sm:$0xff] %v4168_v35  ;;  %480 = vperm.xlu0 %3451, %v4168_v35   ;;  %p3454_p12 = scmp.ne.s32.totalorder %s2408_s8, %s3453_s21 }
 0x132   : > { %5207 = vst [vmem:[#allocation11_spill] sm:$0xff] %v4018_v63  ;;  %v948_v49 = vsel %vm947_vm14, %v940_v60, %v942_v62  ;;  %v950_v10 = vsel %vm949_vm15, %v944_v36, %v946_v52  ;;  %vm5163_vm1 = vcmp.lt.f32.partialorder %v4018_v63, %v4011_v41  ;;  %v5214_v57 = vmov 0 }
 0x133   : > { %vm951_vm2 = vcmp.lt.s32.totalorder %v948_v49, %v950_v10  ;;  %v2340_v11 = vsel %vm5163_vm1, %v4018_v63, %v4011_v41  ;;  %v5224_v59 = vmov 0  ;;  %p3455_p13 = pnand %p3454_p12, %p3652_p4 }
 0x134   : > { %v952_v12 = vsel %vm951_vm2, %v948_v49, %v950_v10  ;;  %2350 = vst [vmem:[#allocation2] sm:$0x1] %v2340_v11  ;;  %vm2357_vm3 = vcmp.lt.f32.partialorder %v2340_v11, 1e+30  ;;  %v1010_v11 = vld [vmem:[%s4166_s23] sm:$0x7] }
 0x135   : > { %v953_v13 = vrot.slane %v952_v12, 4  ;;  %v2730_v8 = vsel %vm2357_vm3, 1.0, %v3564_v42  ;;  %p3456_p0 = pneg %p3455_p13 }
 0x136   : > { %2360 = vst [vmem:[%s410_s16] sm:$0x1] %v2730_v8 }
 0x137   : > { %vm954_vm9 = vcmp.lt.s32.totalorder %v952_v12, %v953_v13 }
 0x138   : > { %v955_v14 = vsel %vm954_vm9, %v952_v12, %v953_v13 }
 0x139   : > { %v956_v4 = vrot.slane %v955_v14, 2 }
 0x13b   : > { %vm957_vm4 = vcmp.lt.s32.totalorder %v955_v14, %v956_v4 }
 0x13c   : > { %v958_v16 = vsel %vm957_vm4, %v955_v14, %v956_v4 }
 0x13d   : > { %v959_v18 = vrot.slane %v958_v16, 1 }
 0x13f   : > { %vm960_vm5 = vcmp.lt.s32.totalorder %v958_v16, %v959_v18 }
 0x140   : > { %v4031_v19 = vsel %vm960_vm5, %v958_v16, %v959_v18  ;;  %v4247_v18 = vand.u32 4294901760, %v1010_v11 }
 0x141   : > { %vm4035_vm6 = vcmp.eq.s32.totalorder %v3895_v1, %v4031_v19  ;;  %vm4041_vm7 = vcmp.eq.s32.totalorder %v3898_v26, %v4031_v19  ;;  %vm4047_vm8 = vcmp.eq.s32.totalorder %v3901_v29, %v4031_v19  ;;  %vm4053_vm10 = vcmp.eq.s32.totalorder %v3906_v48, %v4031_v19 }
 0x142   : > { %v5211_v47 = vsel %vm4041_vm7, 4294967295, %v5210_v47  ;;  %v5215_v57 = vsel %vm4053_vm10, 4294967295, %v5214_v57  ;;  %vm4059_vm11 = vcmp.eq.s32.totalorder %v3909_v31, %v4031_v19  ;;  %vm4065_vm12 = vcmp.eq.s32.totalorder %v3912_v50, %v4031_v19 }
 0x143   : > { %vm4071_vm0 = vcmp.eq.s32.totalorder %v3915_v51, %v4031_v19  ;;  %v5167_v48 = vmov 1.0   ;;  %v2632_v50 = vsel %vm4065_vm12, 1.0, %v3564_v42  ;;  %v2631_v51 = vsel %vm4059_vm11, 1.0, %v3564_v42 }
 0x144   : > { %2951 = vmatpush3.msk.msra.mxu0 %vm4071_vm0, %v5167_v48  ;;  %v2633_v31 = vsel %vm4071_vm0, 1.0, %v3564_v42  ;;  %v2630_v33 = vsel %vm4053_vm10, 1.0, %v3564_v42  ;;  %v4093_v61 = vsub.f32 %v2632_v50, %v2632_v50  ;;  %v4095_v54 = vsub.f32 %v2631_v51, %v2631_v51 }
 0x145   : > { %2952 = vmatprep.subr.mxu0 %v3564_v42  ;;  %v4091_v46 = vsub.f32 %v2633_v31, %v2633_v31  ;;  %v4097_v20 = vsub.f32 %v2630_v33, %v2630_v33  ;;  %vm4101_vm13 = vcmp.eq.s32.totalorder %v3888_v45, %v4031_v19  ;;  %v2629_v38 = vsel %vm4047_vm8, 1.0, %v3564_v42 }
 0x146   : > { %2953 = vmatpush3.msk.msra.mxu0 %vm4065_vm12, %v5167_v48  ;;  %v2628_v55 = vsel %vm4041_vm7, 1.0, %v3564_v42  ;;  %v4119_v45 = vand.u32 4294901760, %v4093_v61  ;;  %v4122_v15 = vand.u32 4294901760, %v4095_v54  ;;  %v2627_v40 = vsel %vm4035_vm6, 1.0, %v3564_v42 }
 0x147   : > { %2954 = vmatprep.subr.mxu0 %v3564_v42  ;;  %v4116_v21 = vand.u32 4294901760, %v4091_v46  ;;  %v4132_v37 = vand.u32 4294901760, %v4097_v20  ;;  %v4134_v32 = vsub.f32 %v2629_v38, %v2629_v38  ;;  %v4144_v30 = vsub.f32 %v2628_v55, %v2628_v55 }
 0x148   : > { %2955 = vmatpush3.msk.msra.mxu0 %vm4059_vm11, %v5167_v48  ;;  %v1115_v2 = vsub.f32 %v4093_v61, %v4119_v45  ;;  %vm4150_vm14 = vcmp.eq.s32.totalorder %v3885_v23, %v4031_v19  ;;  %v4157_v3 = vsub.f32 %v2627_v40, %v2627_v40  ;;  %v2626_v5 = vsel %vm4101_vm13, 1.0, %v3564_v42 }
 0x149   : > { %2956 = vmatprep.subr.mxu0 %v3564_v42  ;;  %v1108_v53 = vsub.f32 %v4091_v46, %v4116_v21  ;;  %v5225_v59 = vsel %vm4150_vm14, 4294967295, %v5224_v59  ;;  %vm4173_vm15 = vcmp.eq.s32.totalorder %v3882_v34, %v4031_v19  ;;  %v1122_v9 = vsub.f32 %v4095_v54, %v4122_v15 }
 0x14a   : > { %2957 = vmatpush3.msk.msra.mxu0 %vm4053_vm10, %v5167_v48  ;;  %v4183_v60 = vand.u32 4294901760, %v4134_v32  ;;  %v1129_v34 = vsub.f32 %v4097_v20, %v4132_v37  ;;  %vm4193_vm2 = vcmp.eq.s32.totalorder %v3879_v28, %v4031_v19  ;;  %v4199_v36 = vand.u32 4294901760, %v1115_v2 }
 0x14b   : > { %2958 = vmatprep.subr.mxu0 %v3564_v42  ;;  %v4178_v6 = vand.u32 4294901760, %v1108_v53  ;;  %v4202_v52 = vand.u32 4294901760, %v4144_v30  ;;  %v4204_v49 = vsub.f32 %v2626_v5, %v2626_v5  ;;  %v2625_v10 = vsel %vm4150_vm14, 1.0, %v3564_v42 }
 0x14c   : > { %2959 = vmatpush3.msk.msra.mxu0 %vm4047_vm8, %v5167_v48  ;;  %v4215_v28 = vand.u32 4294901760, %v4157_v3  ;;  %v2624_v12 = vsel %vm4173_vm15, 1.0, %v3564_v42  ;;  %v4222_v13 = vand.u32 4294901760, %v1122_v9  ;;  %v1136_v8 = vsub.f32 %v4134_v32, %v4183_v60 }
 0x14d   : > { %2960 = vmatprep.subr.mxu0 %v3564_v42  ;;  %2986 = vmatpush3.msra.mxu1 %v4178_v6  ;;  %vm4228_vm3 = vcmp.eq.s32.totalorder %v3876_v27, %v4031_v19  ;;  %v4232_v4 = vsub.f32 %v2625_v10, %v2625_v10  ;;  %vm4236_vm9 = vcmp.eq.s32.totalorder %v3873_v43, %v4031_v19  ;;  %v2623_v27 = vsel %vm4193_vm2, 1.0, %v3564_v42 }
 0x14e   : > { %2961 = vmatpush3.msk.msra.mxu0 %vm4041_vm7, %v5167_v48  ;;  %2987 = vmatprep.subr.mxu1 %v3564_v42  ;;  %v4251_v43 = vand.u32 4294901760, %v1129_v34  ;;  %v1143_v31 = vsub.f32 %v4144_v30, %v4202_v52  ;;  %v4256_v50 = vand.u32 4294901760, %v4204_v49  ;;  %v4258_v51 = vsub.f32 %v2624_v12, %v2624_v12 }
 0x14f   : > { %2962 = vmatprep.subr.mxu0 %v3564_v42  ;;  %2988 = vmatpush3.msra.mxu1 %v4199_v36  ;;  %v1150_v33 = vsub.f32 %v4157_v3, %v4215_v28  ;;  %v2622_v38 = vsel %vm4228_vm3, 1.0, %v3564_v42  ;;  %vm4271_vm4 = vcmp.eq.s32.totalorder %v3870_v24, %v4031_v19  ;;  %v4277_v40 = vand.u32 4294901760, %v1136_v8 }
 0x150   : > { %2963 = vmatpush3.msk.msra.mxu0 %vm4035_vm6, %v5167_v48  ;;  %2989 = vmatprep.subr.mxu1 %v3564_v42  ;;  %5235 = vst [vmem:[#allocation13_spill] sm:$0xff] %v4251_v43  ;;  %v4280_v53 = vand.u32 4294901760, %v4232_v4  ;;  %v4282_v2 = vsub.f32 %v2623_v27, %v2623_v27  ;;  %vm4290_vm5 = vcmp.eq.s32.totalorder %v3867_v39, %v4031_v19  ;;  %v2621_v9 = vsel %vm4236_vm9, 1.0, %v3564_v42 }
 0x151   : > { %2964 = vmatprep.subr.mxu0 %v3564_v42  ;;  %2990 = vmatpush3.msra.mxu1 %v4222_v13  ;;  %5238 = vst [vmem:[#allocation14_spill] sm:$0xff] %v4277_v40  ;;  %v4295_v5 = vsub.f32 %v1010_v11, %v4247_v18  ;;  %v4302_v34 = vand.u32 4294901760, %v1143_v31  ;;  %v1157_v10 = vsub.f32 %v4204_v49, %v4256_v50  ;;  %v4307_v39 = vand.u32 4294901760, %v4258_v51 }
 0x152   : > { %2965 = vmatpush3.msk.msra.mxu0 %vm4101_vm13, %v5167_v48  ;;  %2991 = vmatprep.subr.mxu1 %v3564_v42  ;;  %v4309_v12 = vsub.f32 %v2622_v38, %v2622_v38  ;;  %v4315_v11 = vand.u32 4294901760, %v1150_v33  ;;  %v2620_v8 = vsel %vm4271_vm4, 1.0, %v3564_v42  ;;  %v1164_v27 = vsub.f32 %v4232_v4, %v4280_v53 }
 0x153   : > { %2966 = vmatprep.subr.mxu0 %v3564_v42  ;;  %2992 = vmatpush3.msra.mxu1 %v4251_v43  ;;  %5241 = vst [vmem:[#allocation15_spill] sm:$0xff] %v4302_v34  ;;  %v4325_v31 = vand.u32 4294901760, %v4282_v2  ;;  %vm4329_vm1 = vcmp.eq.s32.totalorder %v3705_v22, %v4031_v19  ;;  %v4333_v33 = vsub.f32 %v2621_v9, %v2621_v9  ;;  %v2619_v0 = vsel %vm4290_vm5, 1.0, %v3564_v42 }
 0x154   : > { %2967 = vmatpush3.msk.msra.mxu0 %vm4150_vm14, %v5167_v48  ;;  %2993 = vmatprep.subr.mxu1 %v3564_v42  ;;  %5242 = vst [vmem:[#allocation16_spill] sm:$0xff] %v4315_v11  ;;  %v4345_v19 = vand.u32 4294901760, %v1157_v10  ;;  %v1171_v9 = vsub.f32 %v4258_v51, %v4307_v39  ;;  %v4350_v17 = vand.u32 4294901760, %v4309_v12  ;;  %v5246_v22 = vmov 1.0  }
 0x155   : > { %2968 = vmatprep.subr.mxu0 %v3564_v42  ;;  %2994 = vmatpush3.msra.mxu1 %v4277_v40  ;;  %v2618_v25 = vsel %vm4329_vm1, 1.0, %v3564_v42  ;;  %v4363_v10 = vand.u32 4294901760, %v1164_v27  ;;  %v4368_v41 = vand.u32 4294901760, %v4333_v33  ;;  %v4370_v63 = vsub.f32 %v2619_v0, %v2619_v0 }
 0x156   : > { %2969 = vmatpush3.msk.msra.mxu0 %vm4173_vm15, %v5167_v48  ;;  %2995 = vmatprep.subr.mxu1 %v3564_v42  ;;  %5245 = vst [vmem:[#allocation17_spill] sm:$0xff] %v4345_v19  ;;  %v4381_v27 = vand.u32 4294901760, %v1171_v9  ;;  %v1185_v0 = vsub.f32 %v4309_v12, %v4350_v17  ;;  %v4388_v40 = vsub.f32 %v2618_v25, %v2618_v25 }
 0x157   : > { %2970 = vmatprep.subr.mxu0 %v3564_v42  ;;  %2996 = vmatpush3.msra.mxu1 %v4302_v34  ;;  %5247 = vst [vmem:[#allocation18_spill] sm:$0xff] %v4363_v10  ;;  %v1192_v9 = vsub.f32 %v4333_v33, %v4368_v41 }
 0x158   : > { %2971 = vmatpush3.msk.msra.mxu0 %vm4193_vm2, %v5167_v48  ;;  %2997 = vmatprep.subr.mxu1 %v3564_v42  ;;  %v4352_v48 = vsub.f32 %v2620_v8, %v2620_v8  ;;  %v1178_v8 = vsub.f32 %v4282_v2, %v4325_v31  ;;  %5249 = vst [vmem:[#allocation19_spill] sm:$0xff] %v4381_v27  ;;  %v4414_v43 = vand.u32 4294901760, %v4388_v40 }
 0x159   : > { %2972 = vmatprep.subr.mxu0 %v3564_v42  ;;  %2998 = vmatpush3.msra.mxu1 %v4315_v11  ;;  %v5248_v11 = vand.u32 4294901760, %v4295_v5 }
 0x15a   : > { %2973 = vmatpush3.msk.msra.mxu0 %vm4228_vm3, %v5246_v22  ;;  %2999 = vmatprep.subr.mxu1 %v3564_v42  ;;  %v4386_v34 = vand.u32 4294901760, %v4352_v48  ;;  %v1213_v35 = vsub.f32 %v4388_v40, %v4414_v43 }
 0x15b   : > { %2974 = vmatprep.subr.mxu0 %v3564_v42  ;;  %3000 = vmatpush3.msra.mxu1 %v4345_v19  ;;  %v1097_v19 = vsub.f32 %v4295_v5, %v5248_v11  ;;  %v4396_v11 = vand.u32 4294901760, %v1178_v8 }
 0x15c   : > { %2975 = vmatpush3.msk.msra.mxu0 %vm4236_vm9, %v5246_v22  ;;  %3001 = vmatprep.subr.mxu1 %v3564_v42  ;;  %v1199_v8 = vsub.f32 %v4352_v48, %v4386_v34 }
 0x15d   : > { %2976 = vmatprep.subr.mxu0 %v3564_v42  ;;  %3002 = vmatpush3.msra.mxu1 %v4363_v10  ;;  %5250 = vst [vmem:[#allocation20_spill] sm:$0xff] %v4396_v11  ;;  %v4401_v10 = vand.u32 4294901760, %v4370_v63  ;;  %v1098_v25 = vand.u32 4294901760, %v1097_v19  ;;  %v4422_v19 = vand.u32 4294901760, %v1192_v9 }
 0x15e   : > { %2977 = vmatpush3.msk.msra.mxu0 %vm4271_vm4, %v5246_v22  ;;  %3003 = vmatprep.subr.mxu1 %v3564_v42 }
 0x15f   : > { %2978 = vmatprep.subr.mxu0 %v3564_v42  ;;  %3004 = vmatpush3.msra.mxu1 %v4381_v27  ;;  %v4409_v27 = vand.u32 4294901760, %v1185_v0  ;;  %v1206_v0 = vsub.f32 %v4370_v63, %v4401_v10 }
 0x160   : > { %2979 = vmatpush3.msk.msra.mxu0 %vm4290_vm5, %v5246_v22  ;;  %3005 = vmatprep.subr.mxu1 %v3564_v42 }
 0x161   : > { %2980 = vmatprep.subr.mxu0 %v3564_v42  ;;  %3006 = vmatpush3.msra.mxu1 %v4396_v11  ;;  %v4429_v11 = vand.u32 4294901760, %v1199_v8  ;;  %v4437_v9 = vand.u32 4294901760, %v1206_v0 }
 0x162   : > { %2981 = vmatpush3.msk.msra.mxu0 %vm4329_vm1, %v5246_v22  ;;  %3007 = vmatprep.subr.mxu1 %v3564_v42 }
 0x163   : > { %3008 = vmatpush3.msra.mxu1 %v4409_v27  ;;  %3020 = vmatprep.subr.mxu0 %v3564_v42 }
 0x164   : > { %2983 = vmatmul.mubr.f32.vlgmr.msra.gmra.mxu0 %v1098_v25  ;;  %3009 = vmatprep.subr.mxu1 %v3564_v42  ;;  %v4443_v25 = vand.u32 4294901760, %v1213_v35  ;;  %v5252_v35 = vand.u32 4294901760, %v4295_v5 }
 0x165   : > { %3021 = vmatpush3.msra.mxu0 %v4091_v46  ;;  %3010 = vmatpush3.msra.mxu1 %v4422_v19 }
 0x166   : > { %3022 = vmatprep.subr.mxu0 %v3564_v42  ;;  %3011 = vmatprep.subr.mxu1 %v3564_v42 }
 0x167   : > { %3023 = vmatpush3.msra.mxu0 %v4093_v61  ;;  %3012 = vmatpush3.msra.mxu1 %v4429_v11 }
 0x168   : > { %3024 = vmatprep.subr.mxu0 %v3564_v42  ;;  %3013 = vmatprep.subr.mxu1 %v3564_v42 }
 0x169   : > { %3025 = vmatpush3.msra.mxu0 %v4095_v54  ;;  %3014 = vmatpush3.msra.mxu1 %v4437_v9 }
 0x16a   : > { %3026 = vmatprep.subr.mxu0 %v3564_v42  ;;  %3015 = vmatprep.subr.mxu1 %v3564_v42 }
 0x16b   : > { %3027 = vmatpush3.msra.mxu0 %v4097_v20  ;;  %3016 = vmatpush3.msra.mxu1 %v4443_v25 }
 0x16c   : > { %3028 = vmatprep.subr.mxu0 %v3564_v42  ;;  %3018 = vmatmul.mubr.f32.vlgmr.msra.gmra.mxu1 %v4247_v18 }
 0x16d   : > { %3029 = vmatpush3.msra.mxu0 %v4134_v32  ;;  %3055 = vmatprep.subr.mxu1 %v3564_v42 }
 0x16e   : > { %3030 = vmatprep.subr.mxu0 %v3564_v42  ;;  %3056 = vmatpush3.msk.msra.mxu1 %vm4071_vm0, %v5246_v22 }
 0x16f   : > { %3031 = vmatpush3.msra.mxu0 %v4144_v30  ;;  %3057 = vmatprep.subr.mxu1 %v3564_v42 }
 0x170   : > { %3032 = vmatprep.subr.mxu0 %v3564_v42  ;;  %3058 = vmatpush3.msk.msra.mxu1 %vm4065_vm12, %v5246_v22 }
 0x171   : > { %3033 = vmatpush3.msra.mxu0 %v4157_v3  ;;  %3059 = vmatprep.subr.mxu1 %v3564_v42 }
 0x172   : > { %3034 = vmatprep.subr.mxu0 %v3564_v42  ;;  %3060 = vmatpush3.msk.msra.mxu1 %vm4059_vm11, %v5246_v22 }
 0x173   : > { %3035 = vmatpush3.msra.mxu0 %v4204_v49  ;;  %3061 = vmatprep.subr.mxu1 %v3564_v42 }
 0x174   : > { %3036 = vmatprep.subr.mxu0 %v3564_v42  ;;  %3062 = vmatpush3.msk.msra.mxu1 %vm4053_vm10, %v5246_v22 }
 0x175   : > { %3037 = vmatpush3.msra.mxu0 %v4232_v4  ;;  %3063 = vmatprep.subr.mxu1 %v3564_v42 }
 0x176   : > { %3038 = vmatprep.subr.mxu0 %v3564_v42  ;;  %3064 = vmatpush3.msk.msra.mxu1 %vm4047_vm8, %v5246_v22 }
 0x177   : > { %3039 = vmatpush3.msra.mxu0 %v4258_v51  ;;  %3065 = vmatprep.subr.mxu1 %v3564_v42 }
 0x178   : > { %3040 = vmatprep.subr.mxu0 %v3564_v42  ;;  %3066 = vmatpush3.msk.msra.mxu1 %vm4041_vm7, %v5246_v22 }
 0x179   : > { %3041 = vmatpush3.msra.mxu0 %v4282_v2  ;;  %3067 = vmatprep.subr.mxu1 %v3564_v42 }
 0x17a   : > { %3042 = vmatprep.subr.mxu0 %v3564_v42  ;;  %3068 = vmatpush3.msk.msra.mxu1 %vm4035_vm6, %v5246_v22 }
 0x17b   : > { %3043 = vmatpush3.msra.mxu0 %v4309_v12  ;;  %3069 = vmatprep.subr.mxu1 %v3564_v42 }
 0x17c   : > { %3044 = vmatprep.subr.mxu0 %v3564_v42  ;;  %3070 = vmatpush3.msk.msra.mxu1 %vm4101_vm13, %v5246_v22 }
 0x17d   : > { %3045 = vmatpush3.msra.mxu0 %v4333_v33  ;;  %3071 = vmatprep.subr.mxu1 %v3564_v42 }
 0x17e   : > { %3046 = vmatprep.subr.mxu0 %v3564_v42  ;;  %3072 = vmatpush3.msk.msra.mxu1 %vm4150_vm14, %v5246_v22  ;;  %vm5251_vm14 = vmmov 0  }
 0x17f   : > { %3047 = vmatpush3.msra.mxu0 %v4352_v48  ;;  %3073 = vmatprep.subr.mxu1 %v3564_v42 }
 0x180   : > { %3048 = vmatprep.subr.mxu0 %v3564_v42  ;;  %3074 = vmatpush3.msk.msra.mxu1 %vm4173_vm15, %v5246_v22 }
 0x181   : > { %3049 = vmatpush3.msra.mxu0 %v4370_v63  ;;  %3075 = vmatprep.subr.mxu1 %v3564_v42 }
 0x182   : > { %3050 = vmatprep.subr.mxu0 %v3564_v42  ;;  %3076 = vmatpush3.msk.msra.mxu1 %vm4193_vm2, %v5246_v22 }
 0x183   : > { %3051 = vmatpush3.msra.mxu0 %v4388_v40  ;;  %3052 = vmatprep.mubr.msk.f32.mxu0 %vm5251_vm14, %v3564_v42 }
 0x184   : > { %3077 = vmatprep.subr.mxu1 %v3564_v42  ;;  %3053 = vmatmul.mubr.f32.vlgmr.msra.gmra.mxu0 %v4295_v5 }
 0x185   : > { %3078 = vmatpush3.msk.msra.mxu1 %vm4228_vm3, %v5246_v22  ;;  %3090 = vmatprep.subr.mxu0 %v3564_v42 }
 0x186   : > { %3079 = vmatprep.subr.mxu1 %v3564_v42  ;;  %3091 = vmatpush3.msra.mxu0 %v4116_v21 }
 0x187   : > { %3080 = vmatpush3.msk.msra.mxu1 %vm4236_vm9, %v5246_v22  ;;  %3092 = vmatprep.subr.mxu0 %v3564_v42 }
 0x188   : > { %3081 = vmatprep.subr.mxu1 %v3564_v42  ;;  %3093 = vmatpush3.msra.mxu0 %v4119_v45 }
 0x189   : > { %3082 = vmatpush3.msk.msra.mxu1 %vm4271_vm4, %v5246_v22  ;;  %3094 = vmatprep.subr.mxu0 %v3564_v42 }
 0x18a   : > { %3083 = vmatprep.subr.mxu1 %v3564_v42  ;;  %3095 = vmatpush3.msra.mxu0 %v4122_v15 }
 0x18b   : > { %3084 = vmatpush3.msk.msra.mxu1 %vm4290_vm5, %v5246_v22  ;;  %3096 = vmatprep.subr.mxu0 %v3564_v42 }
 0x18c   : > { %3085 = vmatprep.subr.mxu1 %v3564_v42  ;;  %3097 = vmatpush3.msra.mxu0 %v4132_v37 }
 0x18d   : > { %3086 = vmatpush3.msk.msra.mxu1 %vm4329_vm1, %v5246_v22  ;;  %3087 = vmatprep.mubr.msk.f32.mxu1 %vm5251_vm14, %v3564_v42 }
 0x18e   : > { %3098 = vmatprep.subr.mxu0 %v3564_v42  ;;  %3088 = vmatmul.mubr.f32.vlgmr.msra.gmra.mxu1 %v5252_v35  ;;  %v5259_v35 = vld [vmem:[#allocation16_spill] sm:$0xff] }
 0x18f   : > { %3099 = vmatpush3.msra.mxu0 %v4183_v60  ;;  %3125 = vmatprep.subr.mxu1 %v3564_v42 }
 0x190   : > { %3100 = vmatprep.subr.mxu0 %v3564_v42  ;;  %3126 = vmatpush3.msk.msra.mxu1 %vm4071_vm0, %v5246_v22 }
 0x191   : > { %3101 = vmatpush3.msra.mxu0 %v4202_v52  ;;  %3127 = vmatprep.subr.mxu1 %v3564_v42 }
 0x192   : > { %3102 = vmatprep.subr.mxu0 %v3564_v42  ;;  %3128 = vmatpush3.msk.msra.mxu1 %vm4065_vm12, %v5246_v22 }
 0x193   : > { %3103 = vmatpush3.msra.mxu0 %v4215_v28  ;;  %3129 = vmatprep.subr.mxu1 %v3564_v42 }
 0x194   : > { %3104 = vmatprep.subr.mxu0 %v3564_v42  ;;  %3130 = vmatpush3.msk.msra.mxu1 %vm4059_vm11, %v5246_v22 }
 0x195   : > { %3105 = vmatpush3.msra.mxu0 %v4256_v50  ;;  %3131 = vmatprep.subr.mxu1 %v3564_v42 }
 0x196   : > { %3106 = vmatprep.subr.mxu0 %v3564_v42  ;;  %3132 = vmatpush3.msk.msra.mxu1 %vm4053_vm10, %v5246_v22 }
 0x197   : > { %3107 = vmatpush3.msra.mxu0 %v4280_v53  ;;  %3133 = vmatprep.subr.mxu1 %v3564_v42 }
 0x198   : > { %3108 = vmatprep.subr.mxu0 %v3564_v42  ;;  %3134 = vmatpush3.msk.msra.mxu1 %vm4047_vm8, %v5246_v22 }
 0x199   : > { %3109 = vmatpush3.msra.mxu0 %v4307_v39  ;;  %3135 = vmatprep.subr.mxu1 %v3564_v42 }
 0x19a   : > { %3110 = vmatprep.subr.mxu0 %v3564_v42  ;;  %3136 = vmatpush3.msk.msra.mxu1 %vm4041_vm7, %v5246_v22  ;;  %vm5253_vm7 = vnez %v5225_v59 }
 0x19b   : > { %3111 = vmatpush3.msra.mxu0 %v4325_v31  ;;  %3137 = vmatprep.subr.mxu1 %v3564_v42 }
 0x19c   : > { %3112 = vmatprep.subr.mxu0 %v3564_v42  ;;  %3138 = vmatpush3.msk.msra.mxu1 %vm4035_vm6, %v5246_v22 }
 0x19d   : > { %3113 = vmatpush3.msra.mxu0 %v4350_v17  ;;  %3139 = vmatprep.subr.mxu1 %v3564_v42 }
 0x19e   : > { %3114 = vmatprep.subr.mxu0 %v3564_v42  ;;  %3140 = vmatpush3.msk.msra.mxu1 %vm4101_vm13, %v5246_v22 }
 0x19f   : > { %3115 = vmatpush3.msra.mxu0 %v4368_v41  ;;  %3141 = vmatprep.subr.mxu1 %v3564_v42 }
 0x1a0   : > { %3116 = vmatprep.subr.mxu0 %v3564_v42  ;;  %3142 = vmatpush3.msk.msra.mxu1 %vm5253_vm7, %v5246_v22 }
 0x1a1   : > { %3117 = vmatpush3.msra.mxu0 %v4386_v34  ;;  %3143 = vmatprep.subr.mxu1 %v3564_v42 }
 0x1a2   : > { %3118 = vmatprep.subr.mxu0 %v3564_v42  ;;  %3144 = vmatpush3.msk.msra.mxu1 %vm4173_vm15, %v5246_v22 }
 0x1a3   : > { %3119 = vmatpush3.msra.mxu0 %v4401_v10  ;;  %3145 = vmatprep.subr.mxu1 %v3564_v42 }
 0x1a4   : > { %3120 = vmatprep.subr.mxu0 %v3564_v42  ;;  %3146 = vmatpush3.msk.msra.mxu1 %vm4193_vm2, %v5246_v22 }
 0x1a5   : > { %3121 = vmatpush3.msra.mxu0 %v4414_v43  ;;  %3122 = vmatprep.mubr.msk.f32.mxu0 %vm5251_vm14, %v3564_v42 }
 0x1a6   : > { %3147 = vmatprep.subr.mxu1 %v3564_v42  ;;  %3123 = vmatmul.mubr.f32.vlgmr.msra.gmra.mxu0 %v4247_v18 }
 0x1a7   : > { %3148 = vmatpush3.msk.msra.mxu1 %vm4228_vm3, %v5246_v22  ;;  %3160 = vmatprep.subr.msk.mxu0 %vm4071_vm0, %v5246_v22 }
 0x1a8   : > { %3149 = vmatprep.subr.mxu1 %v3564_v42  ;;  %3161 = vmatpush3.msk.msra.mxu0 %vm4071_vm0, %v5246_v22 }
 0x1a9   : > { %3150 = vmatpush3.msk.msra.mxu1 %vm4236_vm9, %v5246_v22  ;;  %3162 = vmatprep.subr.msk.mxu0 %vm4065_vm12, %v5246_v22 }
 0x1aa   : > { %3151 = vmatprep.subr.mxu1 %v3564_v42  ;;  %3163 = vmatpush3.msk.msra.mxu0 %vm4065_vm12, %v5246_v22 }
 0x1ab   : > { %3152 = vmatpush3.msk.msra.mxu1 %vm4271_vm4, %v5246_v22  ;;  %3164 = vmatprep.subr.msk.mxu0 %vm4059_vm11, %v5246_v22 }
 0x1ac   : > { %3153 = vmatprep.subr.mxu1 %v3564_v42  ;;  %3165 = vmatpush3.msk.msra.mxu0 %vm4059_vm11, %v5246_v22 }
 0x1ad   : > { %3154 = vmatpush3.msk.msra.mxu1 %vm4290_vm5, %v5246_v22  ;;  %3166 = vmatprep.subr.msk.mxu0 %vm4053_vm10, %v5246_v22 }
 0x1ae   : > { %3155 = vmatprep.subr.mxu1 %v3564_v42  ;;  %3167 = vmatpush3.msk.msra.mxu0 %vm4053_vm10, %v5246_v22  ;;  %vm5254_vm10 = vnez %v5211_v47 }
 0x1af   : > { %3156 = vmatpush3.msk.msra.mxu1 %vm4329_vm1, %v5246_v22  ;;  %3157 = vmatprep.mubr.msk.f32.mxu1 %vm5251_vm14, %v3564_v42  ;;  %v4691_v42 = vand.u32 4294901760, %v4146_v44  ;;  %vm5264_vm14 = vnez %v5215_v57 }
 0x1b0   : > { %3168 = vmatprep.subr.msk.mxu0 %vm4047_vm8, %v5246_v22  ;;  %3158 = vmatmul.mubr.f32.vlgmr.msra.gmra.mxu1 %v4247_v18 }
 0x1b1   : > { %3169 = vmatpush3.msk.msra.mxu0 %vm4047_vm8, %v5246_v22  ;;  %3195 = vmatprep.subr.mxu1 %v4178_v6  ;;  %v4714_v5 = vsub.f32 %v4146_v44, %v4691_v42  ;;  %v5258_v44 = vld [vmem:[#allocation15_spill] sm:$0xff] }
 0x1b2   : > { %3170 = vmatprep.subr.msk.mxu0 %vm5254_vm10, %v5246_v22  ;;  %3196 = vmatpush3.msra.mxu1 %v4178_v6  ;;  %v5255_v6 = vld [vmem:[#allocation12_spill] sm:$0xff] }
 0x1b3   : > { %3171 = vmatpush3.msk.msra.mxu0 %vm5254_vm10, %v5246_v22  ;;  %3197 = vmatprep.subr.mxu1 %v4199_v36  ;;  %v4698_v18 = vand.u32 4294901760, %v5255_v6  ;;  %v5196_v0 = vand.u32 4294901760, %v4714_v5 }
 0x1b4   : > { %3172 = vmatprep.subr.msk.mxu0 %vm4035_vm6, %v5246_v22  ;;  %3198 = vmatpush3.msra.mxu1 %v4199_v36  ;;  %v5256_v36 = vld [vmem:[#allocation13_spill] sm:$0xff] }
 0x1b5   : > { %3173 = vmatpush3.msk.msra.mxu0 %vm4035_vm6, %v5246_v22  ;;  %3199 = vmatprep.subr.mxu1 %v4222_v13  ;;  %v4722_v8 = vsub.f32 %v5255_v6, %v4698_v18 }
 0x1b6   : > { %3174 = vmatprep.subr.msk.mxu0 %vm4101_vm13, %v5246_v22  ;;  %3200 = vmatpush3.msra.mxu1 %v4222_v13  ;;  %v5257_v13 = vld [vmem:[#allocation14_spill] sm:$0xff] }
 0x1b7   : > { %3175 = vmatpush3.msk.msra.mxu0 %vm4101_vm13, %v5246_v22  ;;  %3201 = vmatprep.subr.mxu1 %v5256_v36  ;;  %v5197_v6 = vand.u32 4294901760, %v4722_v8 }
 0x1b8   : > { %3176 = vmatprep.subr.msk.mxu0 %vm5253_vm7, %v5246_v22  ;;  %3202 = vmatpush3.msra.mxu1 %v5256_v36  ;;  %v5260_v36 = vld [vmem:[#allocation17_spill] sm:$0xff] }
 0x1b9   : > { %3177 = vmatpush3.msk.msra.mxu0 %vm5253_vm7, %v5246_v22  ;;  %3203 = vmatprep.subr.mxu1 %v5257_v13 }
 0x1ba   : > { %3178 = vmatprep.subr.msk.mxu0 %vm4173_vm15, %v5246_v22  ;;  %3204 = vmatpush3.msra.mxu1 %v5257_v13  ;;  %v1738_v13 = vsub.f32 %v4714_v5, %v5196_v0 }
 0x1bb   : > { %3179 = vmatpush3.msk.msra.mxu0 %vm4173_vm15, %v5246_v22  ;;  %3205 = vmatprep.subr.mxu1 %v5258_v44 }
 0x1bc   : > { %3180 = vmatprep.subr.msk.mxu0 %vm4193_vm2, %v5246_v22  ;;  %3206 = vmatpush3.msra.mxu1 %v5258_v44  ;;  %v5261_v44 = vld [vmem:[#allocation18_spill] sm:$0xff]  ;;  %v1739_v0 = vand.u32 4294901760, %v1738_v13 }
 0x1bd   : > { %3181 = vmatpush3.msk.msra.mxu0 %vm4193_vm2, %v5246_v22  ;;  %3207 = vmatprep.subr.mxu1 %v5259_v35 }
 0x1be   : > { %3182 = vmatprep.subr.msk.mxu0 %vm4228_vm3, %v5246_v22  ;;  %3208 = vmatpush3.msra.mxu1 %v5259_v35  ;;  %v1748_v35 = vsub.f32 %v4722_v8, %v5197_v6  ;;  %v5263_v6 = vld [vmem:[#allocation20_spill] sm:$0xff] }
 0x1bf   : > { %3183 = vmatpush3.msk.msra.mxu0 %vm4228_vm3, %v5246_v22  ;;  %3209 = vmatprep.subr.mxu1 %v5260_v36 }
 0x1c0   : > { %3184 = vmatprep.subr.msk.mxu0 %vm4236_vm9, %v5246_v22  ;;  %3210 = vmatpush3.msra.mxu1 %v5260_v36  ;;  %v5262_v36 = vld [vmem:[#allocation19_spill] sm:$0xff] }
 0x1c1   : > { %3185 = vmatpush3.msk.msra.mxu0 %vm4236_vm9, %v5246_v22  ;;  %3211 = vmatprep.subr.mxu1 %v5261_v44 }
 0x1c2   : > { %3186 = vmatprep.subr.msk.mxu0 %vm4271_vm4, %v5246_v22  ;;  %3212 = vmatpush3.msra.mxu1 %v5261_v44  ;;  %v1749_v44 = vand.u32 4294901760, %v1748_v35 }
 0x1c3   : > { %3187 = vmatpush3.msk.msra.mxu0 %vm4271_vm4, %v5246_v22  ;;  %3213 = vmatprep.subr.mxu1 %v5262_v36 }
 0x1c4   : > { %3188 = vmatprep.subr.msk.mxu0 %vm4290_vm5, %v5246_v22  ;;  %3214 = vmatpush3.msra.mxu1 %v5262_v36 }
 0x1c5   : > { %3189 = vmatpush3.msk.msra.mxu0 %vm4290_vm5, %v5246_v22  ;;  %3215 = vmatprep.subr.mxu1 %v5263_v6 }
 0x1c6   : > { %3190 = vmatprep.subr.msk.mxu0 %vm4329_vm1, %v5246_v22  ;;  %3216 = vmatpush3.msra.mxu1 %v5263_v6 }
 0x1c7   : > { %3191 = vmatpush3.msk.msra.mxu0 %vm4329_vm1, %v5246_v22  ;;  %3217 = vmatprep.subr.mxu1 %v4409_v27 }
 0x1c8   : > { %3192 = vmatprep.mubr.f32.mxu0 %v1739_v0  ;;  %3218 = vmatpush3.msra.mxu1 %v4409_v27 }
 0x1c9   : > { %3230 = vmatprep.subr.mxu0 %v4091_v46  ;;  %3193 = vmatmul.mubr.f32.vlgmr.msra.gmra.mxu0 %v1749_v44 }
 0x1ca   : > { %3219 = vmatprep.subr.mxu1 %v4422_v19  ;;  %3231 = vmatpush3.msra.mxu0 %v4091_v46  ;;  %v5266_v46 = vand.u32 4294901760, %v4722_v8 }
 0x1cb   : > { %3220 = vmatpush3.msra.mxu1 %v4422_v19  ;;  %3232 = vmatprep.subr.mxu0 %v4093_v61 }
 0x1cc   : > { %3221 = vmatprep.subr.mxu1 %v4429_v11  ;;  %3233 = vmatpush3.msra.mxu0 %v4093_v61 }
 0x1cd   : > { %3222 = vmatpush3.msra.mxu1 %v4429_v11  ;;  %3234 = vmatprep.subr.mxu0 %v4095_v54 }
 0x1ce   : > { %3223 = vmatprep.subr.mxu1 %v4437_v9  ;;  %3235 = vmatpush3.msra.mxu0 %v4095_v54 }
 0x1cf   : > { %3224 = vmatpush3.msra.mxu1 %v4437_v9  ;;  %3236 = vmatprep.subr.mxu0 %v4097_v20 }
 0x1d0   : > { %3225 = vmatprep.subr.mxu1 %v4443_v25  ;;  %3237 = vmatpush3.msra.mxu0 %v4097_v20 }
 0x1d1   : > { %3226 = vmatpush3.msra.mxu1 %v4443_v25  ;;  %3227 = vmatprep.mubr.f32.mxu1 %v4691_v42 }
 0x1d2   : > { %3238 = vmatprep.subr.mxu0 %v4134_v32  ;;  %3228 = vmatmul.mubr.f32.vlgmr.msra.gmra.mxu1 %v4698_v18 }
 0x1d3   : > { %3239 = vmatpush3.msra.mxu0 %v4134_v32  ;;  %3265 = vmatprep.subr.msk.mxu1 %vm4071_vm0, %v5246_v22 }
 0x1d4   : > { %3240 = vmatprep.subr.mxu0 %v4144_v30  ;;  %3266 = vmatpush3.msk.msra.mxu1 %vm4071_vm0, %v5246_v22 }
 0x1d5   : > { %3241 = vmatpush3.msra.mxu0 %v4144_v30  ;;  %3267 = vmatprep.subr.msk.mxu1 %vm4065_vm12, %v5246_v22 }
 0x1d6   : > { %3242 = vmatprep.subr.mxu0 %v4157_v3  ;;  %3268 = vmatpush3.msk.msra.mxu1 %vm4065_vm12, %v5246_v22 }
 0x1d7   : > { %3243 = vmatpush3.msra.mxu0 %v4157_v3  ;;  %3269 = vmatprep.subr.msk.mxu1 %vm4059_vm11, %v5246_v22 }
 0x1d8   : > { %3244 = vmatprep.subr.mxu0 %v4204_v49  ;;  %3270 = vmatpush3.msk.msra.mxu1 %vm4059_vm11, %v5246_v22 }
 0x1d9   : > { %3245 = vmatpush3.msra.mxu0 %v4204_v49  ;;  %3271 = vmatprep.subr.msk.mxu1 %vm5264_vm14, %v5246_v22 }
 0x1da   : > { %3246 = vmatprep.subr.mxu0 %v4232_v4  ;;  %3272 = vmatpush3.msk.msra.mxu1 %vm5264_vm14, %v5246_v22 }
 0x1db   : > { %3247 = vmatpush3.msra.mxu0 %v4232_v4  ;;  %3273 = vmatprep.subr.msk.mxu1 %vm4047_vm8, %v5246_v22 }
 0x1dc   : > { %3248 = vmatprep.subr.mxu0 %v4258_v51  ;;  %3274 = vmatpush3.msk.msra.mxu1 %vm4047_vm8, %v5246_v22 }
 0x1dd   : > { %3249 = vmatpush3.msra.mxu0 %v4258_v51  ;;  %3275 = vmatprep.subr.msk.mxu1 %vm5254_vm10, %v5246_v22 }
 0x1de   : > { %3250 = vmatprep.subr.mxu0 %v4282_v2  ;;  %3276 = vmatpush3.msk.msra.mxu1 %vm5254_vm10, %v5246_v22 }
 0x1df   : > { %3251 = vmatpush3.msra.mxu0 %v4282_v2  ;;  %3277 = vmatprep.subr.msk.mxu1 %vm4035_vm6, %v5246_v22 }
 0x1e0   : > { %3252 = vmatprep.subr.mxu0 %v4309_v12  ;;  %3278 = vmatpush3.msk.msra.mxu1 %vm4035_vm6, %v5246_v22 }
 0x1e1   : > { %3253 = vmatpush3.msra.mxu0 %v4309_v12  ;;  %3279 = vmatprep.subr.msk.mxu1 %vm4101_vm13, %v5246_v22 }
 0x1e2   : > { %3254 = vmatprep.subr.mxu0 %v4333_v33  ;;  %3280 = vmatpush3.msk.msra.mxu1 %vm4101_vm13, %v5246_v22 }
 0x1e3   : > { %3255 = vmatpush3.msra.mxu0 %v4333_v33  ;;  %3281 = vmatprep.subr.msk.mxu1 %vm5253_vm7, %v5246_v22 }
 0x1e4   : > { %3256 = vmatprep.subr.mxu0 %v4352_v48  ;;  %3282 = vmatpush3.msk.msra.mxu1 %vm5253_vm7, %v5246_v22 }
 0x1e5   : > { %3257 = vmatpush3.msra.mxu0 %v4352_v48  ;;  %3283 = vmatprep.subr.msk.mxu1 %vm4173_vm15, %v5246_v22  ;;  %v5265_v48 = vand.u32 4294901760, %v4714_v5 }
 0x1e6   : > { %3258 = vmatprep.subr.mxu0 %v4370_v63  ;;  %3284 = vmatpush3.msk.msra.mxu1 %vm4173_vm15, %v5246_v22 }
 0x1e7   : > { %3259 = vmatpush3.msra.mxu0 %v4370_v63  ;;  %3285 = vmatprep.subr.msk.mxu1 %vm4193_vm2, %v5246_v22  ;;  %v464_v63 = vld [vmem:[%s4166_s23] sm:$0x7]  ;;  %s3459_s23 = scalar_lea.vmem %s3458_s22, 32 }
 0x1e8   : > { %3260 = vmatprep.subr.mxu0 %v4388_v40  ;;  %3286 = vmatpush3.msk.msra.mxu1 %vm4193_vm2, %v5246_v22  ;;  %p3461_p2 = scmp.lt.s32.totalorder %s3459_s23, %s3453_s21 }
 0x1e9   : > { %3261 = vmatpush3.msra.mxu0 %v4388_v40  ;;  %3262 = vmatprep.mubr.f32.mxu0 %v4714_v5 }
 0x1ea   : > { %3287 = vmatprep.subr.msk.mxu1 %vm4228_vm3, %v5246_v22  ;;  %3263 = vmatmul.mubr.f32.vlgmr.msra.gmra.mxu0 %v4722_v8  ;;  %p3462_p3 = por %p3461_p2, %p3460_p1 }
 0x1eb   : > { %3288 = vmatpush3.msk.msra.mxu1 %vm4228_vm3, %v5246_v22  ;;  %3300 = vmatprep.subr.mxu0 %v4116_v21 }
 0x1ec   : > { %3289 = vmatprep.subr.msk.mxu1 %vm4236_vm9, %v5246_v22  ;;  %3301 = vmatpush3.msra.mxu0 %v4116_v21  ;;  %p3463_p5 = pnand %p3462_p3, %p3456_p0 }
 0x1ed   : > { %3290 = vmatpush3.msk.msra.mxu1 %vm4236_vm9, %v5246_v22  ;;  %3302 = vmatprep.subr.mxu0 %v4119_v45 }
 0x1ee   : > { %3291 = vmatprep.subr.msk.mxu1 %vm4271_vm4, %v5246_v22  ;;  %3303 = vmatpush3.msra.mxu0 %v4119_v45 }
 0x1ef   : > { %3292 = vmatpush3.msk.msra.mxu1 %vm4271_vm4, %v5246_v22  ;;  %3304 = vmatprep.subr.mxu0 %v4122_v15 }
 0x1f0   : > { %3293 = vmatprep.subr.msk.mxu1 %vm4290_vm5, %v5246_v22  ;;  %3305 = vmatpush3.msra.mxu0 %v4122_v15 }
 0x1f1   : > { %3294 = vmatpush3.msk.msra.mxu1 %vm4290_vm5, %v5246_v22  ;;  %3306 = vmatprep.subr.mxu0 %v4132_v37 }
 0x1f2   : > { %3295 = vmatprep.subr.msk.mxu1 %vm4329_vm1, %v5246_v22  ;;  %3307 = vmatpush3.msra.mxu0 %v4132_v37 }
 0x1f3   : > { %467 = vperm.xlu1 %3450, %v464_v63   ;;  %3296 = vmatpush3.msk.msra.mxu1 %vm4329_vm1, %v5246_v22 }
 0x1f4   : > { %3297 = vmatprep.mubr.f32.mxu1 %v5265_v48  ;;  %3308 = vmatprep.subr.mxu0 %v4183_v60 }
 0x1f5   : > { %3298 = vmatmul.mubr.f32.vlgmr.msra.gmra.mxu1 %v5266_v46  ;;  %3309 = vmatpush3.msra.mxu0 %v4183_v60 }
 0x1f6   : > { %3335 = vmatprep.subr.msk.mxu1 %vm4071_vm0, %v5246_v22  ;;  %3310 = vmatprep.subr.mxu0 %v4202_v52 }
 0x1f7   : > { %3336 = vmatpush3.msk.msra.mxu1 %vm4071_vm0, %v5246_v22  ;;  %3311 = vmatpush3.msra.mxu0 %v4202_v52 }
 0x1f8   : > { %3337 = vmatprep.subr.msk.mxu1 %vm4065_vm12, %v5246_v22  ;;  %3312 = vmatprep.subr.mxu0 %v4215_v28 }
 0x1f9   : > { %3338 = vmatpush3.msk.msra.mxu1 %vm4065_vm12, %v5246_v22  ;;  %3313 = vmatpush3.msra.mxu0 %v4215_v28 }
 0x1fa   : > { %3339 = vmatprep.subr.msk.mxu1 %vm4059_vm11, %v5246_v22  ;;  %3314 = vmatprep.subr.mxu0 %v4256_v50 }
 0x1fb   : > { %3340 = vmatpush3.msk.msra.mxu1 %vm4059_vm11, %v5246_v22  ;;  %3315 = vmatpush3.msra.mxu0 %v4256_v50 }
 0x1fc   : > { %3341 = vmatprep.subr.msk.mxu1 %vm5264_vm14, %v5246_v22  ;;  %3316 = vmatprep.subr.mxu0 %v4280_v53 }
 0x1fd   : > { %3342 = vmatpush3.msk.msra.mxu1 %vm5264_vm14, %v5246_v22  ;;  %3317 = vmatpush3.msra.mxu0 %v4280_v53 }
 0x1fe   : > { %3343 = vmatprep.subr.msk.mxu1 %vm4047_vm8, %v5246_v22  ;;  %3318 = vmatprep.subr.mxu0 %v4307_v39 }
 0x1ff   : > { %3344 = vmatpush3.msk.msra.mxu1 %vm4047_vm8, %v5246_v22  ;;  %3319 = vmatpush3.msra.mxu0 %v4307_v39 }
 0x200   : > { %3345 = vmatprep.subr.msk.mxu1 %vm5254_vm10, %v5246_v22  ;;  %3320 = vmatprep.subr.mxu0 %v4325_v31 }
 0x201   : > { %3346 = vmatpush3.msk.msra.mxu1 %vm5254_vm10, %v5246_v22  ;;  %3321 = vmatpush3.msra.mxu0 %v4325_v31 }
 0x202   : > { %3347 = vmatprep.subr.msk.mxu1 %vm4035_vm6, %v5246_v22  ;;  %3322 = vmatprep.subr.mxu0 %v4350_v17 }
 0x203   : > { %3348 = vmatpush3.msk.msra.mxu1 %vm4035_vm6, %v5246_v22  ;;  %3323 = vmatpush3.msra.mxu0 %v4350_v17  ;;  %v5267_v17 = vmov 2  }
 0x204   : > { %3349 = vmatprep.subr.msk.mxu1 %vm4101_vm13, %v5246_v22  ;;  %3324 = vmatprep.subr.mxu0 %v4368_v41 }
 0x205   : > { %3350 = vmatpush3.msk.msra.mxu1 %vm4101_vm13, %v5246_v22  ;;  %3325 = vmatpush3.msra.mxu0 %v4368_v41 }
 0x206   : > { %3351 = vmatprep.subr.msk.mxu1 %vm5253_vm7, %v5246_v22  ;;  %3326 = vmatprep.subr.mxu0 %v4386_v34 }
 0x207   : > { %3352 = vmatpush3.msk.msra.mxu1 %vm5253_vm7, %v5246_v22  ;;  %3327 = vmatpush3.msra.mxu0 %v4386_v34 }
 0x208   : > { %3353 = vmatprep.subr.msk.mxu1 %vm4173_vm15, %v5246_v22  ;;  %3328 = vmatprep.subr.mxu0 %v4401_v10 }
 0x209   : > { %3354 = vmatpush3.msk.msra.mxu1 %vm4173_vm15, %v5246_v22  ;;  %3329 = vmatpush3.msra.mxu0 %v4401_v10 }
 0x20a   : > { %3355 = vmatprep.subr.msk.mxu1 %vm4193_vm2, %v5246_v22  ;;  %3330 = vmatprep.subr.mxu0 %v4414_v43 }
 0x20b   : > { %3356 = vmatpush3.msk.msra.mxu1 %vm4193_vm2, %v5246_v22  ;;  %3331 = vmatpush3.msra.mxu0 %v4414_v43 }
 0x20c   : > { %3332 = vmatprep.mubr.f32.mxu0 %v4691_v42  ;;  %3357 = vmatprep.subr.msk.mxu1 %vm4228_vm3, %v5246_v22 }
 0x20d   : > { %3333 = vmatmul.mubr.f32.vlgmr.msra.gmra.mxu0 %v4698_v18  ;;  %3358 = vmatpush3.msk.msra.mxu1 %vm4228_vm3, %v5246_v22 }
 0x20e   : > { %3359 = vmatprep.subr.msk.mxu1 %vm4236_vm9, %v5246_v22  ;;  %3367 = vmatprep.mubr.f32.mxu1 %v4691_v42 }
 0x20f   : > { %3360 = vmatpush3.msk.msra.mxu1 %vm4236_vm9, %v5246_v22  ;;  %3452 = vset.pattern.permute.xlu0 %v5267_v17 }
 0x210   : > { %3361 = vmatprep.subr.msk.mxu1 %vm4271_vm4, %v5246_v22 }
 0x211   : > { %3362 = vmatpush3.msk.msra.mxu1 %vm4271_vm4, %v5246_v22 }
 0x212   : > { %3363 = vmatprep.subr.msk.mxu1 %vm4290_vm5, %v5246_v22 }
 0x213   : > { %3364 = vmatpush3.msk.msra.mxu1 %vm4290_vm5, %v5246_v22 }
 0x214   : > { %3365 = vmatprep.subr.msk.mxu1 %vm4329_vm1, %v5246_v22 }
 0x215   : > { %3366 = vmatpush3.msk.msra.mxu1 %vm4329_vm1, %v5246_v22 }
 0x216   : > { %3368 = vmatmul.mubr.f32.vlgmr.msra.gmra.mxu1 %v4698_v18 }
 0x224   : > { %v1100_v41 = vpop.f32.mrf.mxu0 }
 0x226   : > { %v2984_v7 = vpop.f32.mrf.mxu0 }
 0x22c   : > { %v1251_v47 = vpop.f32.mrf.mxu1 }
 0x22d   : > { %v1252_v56 = vadd.f32 %v1251_v47, %v1100_v41 }
 0x22e   : > { %v3019_v57 = vpop.f32.mrf.mxu1 }
 0x244   : > { %v1355_v1 = vpop.f32.mrf.mxu0 }
 0x246   : > { %v3054_v26 = vpop.f32.mrf.mxu0 }
 0x24e   : > { %v1444_v29 = vpop.f32.mrf.mxu1 }
 0x250   : > { %v3089_v61 = vpop.f32.mrf.mxu1 }
 0x251   : > { %3466 = shalt.err (!%p3463_p5)
}
 0x252   : > { %s3467_s16 = scalar_lea.hbm %s2405_s18, 16  ;;  %s3471_s17 = scalar_lea.hbm %s5160_s7, 32 }
 0x253   : > { %p3468_p6 = scmp.ne.s32.totalorder %s2405_s18, %s3467_s16  ;;  %p3472_p10 = scmp.lt.s32.totalorder %s2405_s18, %s5160_s7 }
 0x254   : > { %p3473_p11 = scmp.lt.s32.totalorder %s3471_s17, %s3467_s16 }
 0x255   : > { %p3469_p7 = pnand %p3468_p6, %p3652_p4 }
 0x256   : > { %p3474_p12 = por %p3473_p11, %p3472_p10 }
 0x257   : > { %p3470_p9 = pneg %p3469_p7 }
 0x259   : > { %p3475_p13 = pnand %p3474_p12, %p3470_p9 }
 0x25b   : > { %3478 = shalt.err (!%p3475_p13)
}
 0x25c   : > { %3371 = dma.vmem_to_hbm [thread:$0]  (%p3652_p4), %s2408_s8, 16, %s2405_s18, %s2374_s19   ;;  %v476_v54 = vpop.permute.xlu1 %475  ;;  %v1356_v58 = vadd.f32 %v1355_v1, %v1252_v56  ;;  %v5268_v15 = vmov 0   ;;  %v5269_v37 = vld [vmem:[#allocation11_spill] sm:$0xff]  ;;  %v5270_v32 = vld [vmem:[#allocation10_spill] sm:$0xff]  ;;  %v5272_v23 = vld [vmem:[#allocation9_spill] sm:$0xff]  ;;  %v481_v27 = vpop.permute.xlu0 %480 }
 0x25d   : > { %s455_s22 = scalar_lea.vmem %s5158_s5, %s3703_s20  ;;  %vm5271_vm1 = vcmp.lt.f32.partialorder %v5269_v37, %v5270_v32  ;;  %v5273_v60 = vsub.s32 0, %v5272_v23  ;;  %s2610_s0 = sshll.u32 %s4014_s12, 4 }
 0x25e   : > { %v1445_v45 = vadd.f32 %v1444_v29, %v1356_v58  ;;  %v2341_v30 = vsel %vm5271_vm1, 1, %v5268_v15  ;;  %s2739_s1 = sshll.u32 %s3551_s27, 8  ;;  %s404_s20 = scalar_lea.vmem [#allocation3], %s2610_s0 }
 0x25f   : > { %v2345_v62 = vrot.slane %v2341_v30, %v5273_v60  ;;  %s2390_s8 = sshll.u32 %s404_s20, 4  ;;  %s5103_s23 = scalar_lea.hbm %s5159_s6, %s2739_s1  ;;  %s5105_s8 = int_to_ptr.vmem [resolvable:$true] %s2390_s8 }
 0x260   : > { %s2369_s27 = scalar_lea.sflag [#allocation4], %s4014_s12  ;;  %s3479_s16 = scalar_lea.vmem %s5105_s8, 256 }
 0x261   : > { %vm2346_vm6 = vcmp.eq.s32.totalorder %v2345_v62, 1  ;;  %p3480_p0 = scmp.ne.s32.totalorder %s5105_s8, %s3479_s16  ;;  %s3569_s30 = smov [#allocation3]  }
 0x262   : > { %s3483_s10 = sshll.u32 %s3569_s30, 4  ;;  %s3484_s10 = int_to_ptr.vmem [resolvable:$false] %s3483_s10 }
 0x263   : > { %p3481_p1 = pnand %p3480_p0, %p3652_p4  ;;  %s3485_s17 = scalar_lea.vmem %s3484_s10, 512 }
 0x264   : > { %p3486_p3 = scmp.lt.s32.totalorder %s5105_s8, %s3484_s10  ;;  %p3487_p5 = scmp.lt.s32.totalorder %s3485_s17, %s3479_s16 }
 0x265   : > { %p3482_p2 = pneg %p3481_p1 }
 0x266   : > { %v1563_v22 = vpop.f32.mrf.mxu0  ;;  %p3488_p6 = por %p3487_p5, %p3486_p3 }
 0x267   : > { %v1564_v3 = vadd.f32 %v1563_v22, %v1445_v45 }
 0x268   : > { %v3124_v20 = vpop.f32.mrf.mxu0  ;;  %p3489_p7 = pnand %p3488_p6, %p3482_p2 }
 0x26e   : > { %v468_v21 = vpop.permute.xlu1 %467 }
 0x26f   : > { %470 = vst [vmem:[%s455_s22] sm:$0x7] %v468_v21 }
 0x270   : > { %v1650_v59 = vpop.f32.mrf.mxu1 }
 0x271   : > { %v1651_v49 = vadd.f32 %v1650_v59, %v1564_v3 }
 0x272   : > { %v3159_v52 = vpop.f32.mrf.mxu1 }
 0x276   : > { %v503_v28 = vld [vmem:[%s455_s22] sm:$0x7] }
 0x277   : > { %v2347_v14 = vsel %vm2346_vm6, %v1651_v49, %v503_v28 }
 0x278   : > { %2351 = vst [vmem:[%s455_s22] sm:$0x7] %v2347_v14 }
 0x289   : > { %v3194_v4 = vpop.f32.mrf.mxu0 }
 0x28b   : > { %v1741_v16 = vpop.f32.mrf.mxu0 }
 0x292   : > { %v3229_v43 = vpop.f32.mrf.mxu1 }
 0x293   : > { %v1909_v53 = vadd.f32 %v3229_v43, %v3194_v4 }
 0x294   : > { %v1902_v51 = vpop.f32.mrf.mxu1 }
 0x295   : > { %v1903_v24 = vadd.f32 %v1902_v51, %v1741_v16 }
 0x2aa   : > { %v3264_v50 = vpop.f32.mrf.mxu0 }
 0x2ab   : > { %v2020_v34 = vadd.f32 %v3264_v50, %v1909_v53 }
 0x2ac   : > { %v2012_v55 = vpop.f32.mrf.mxu0 }
 0x2ad   : > { %v2013_v12 = vadd.f32 %v2012_v55, %v1903_v24 }
 0x2b5   : > { %v3299_v40 = vpop.f32.mrf.mxu1 }
 0x2b6   : > { %v2117_v31 = vadd.f32 %v3299_v40, %v2020_v34 }
 0x2b7   : > { %v2108_v39 = vpop.f32.mrf.mxu1 }
 0x2b8   : > { %v2109_v33 = vadd.f32 %v2108_v39, %v2013_v12 }
 0x2cd   : > { %v3334_v2 = vpop.f32.mrf.mxu0 }
 0x2ce   : > { %v2242_v10 = vadd.f32 %v3334_v2, %v2117_v31 }
 0x2cf   : > { %v2235_v38 = vpop.f32.mrf.mxu0 }
 0x2d0   : > { %v2236_v19 = vadd.f32 %v2235_v38, %v2109_v33 }
 0x2d6   : > { %v3369_v11 = vpop.f32.mrf.mxu1 }
 0x2d7   : > { %v2335_v9 = vadd.f32 %v3369_v11, %v2242_v10 }
 0x2d8   : > { %v2328_v25 = vpop.f32.mrf.mxu1 }
 0x2d9   : > { %v2349_v42 = vsel %vm2346_vm6, %v2335_v9, %v481_v27  ;;  %v2329_v18 = vadd.f32 %v2328_v25, %v2236_v19 }
 0x2da   : > { %2353 = vst [vmem:[%s404_s20 + $0x8] sm:$0xff] %v2349_v42 }
 0x2db   : > { %v2348_v5 = vsel %vm2346_vm6, %v2329_v18, %v476_v54 }
 0x2dc   : > { %2352 = vst [vmem:[%s404_s20] sm:$0xff] %v2348_v5 }
 0x2dd   : > { %3492 = shalt.err (!%p3489_p7)
}
 0x2de   : > { %s3493_s21 = scalar_lea.hbm %s5103_s23, 256  ;;  %s3497_s0 = scalar_lea.hbm %s5159_s6, 512 }
 0x2df   : > { %p3494_p9 = scmp.ne.s32.totalorder %s5103_s23, %s3493_s21  ;;  %p3498_p12 = scmp.lt.s32.totalorder %s5103_s23, %s5159_s6 }
 0x2e0   : > { %p3499_p13 = scmp.lt.s32.totalorder %s3497_s0, %s3493_s21 }
 0x2e1   : > { %p3495_p10 = pnand %p3494_p9, %p3652_p4 }
 0x2e2   : > { %p3500_p0 = por %p3499_p13, %p3498_p12 }
 0x2e3   : > { %p3496_p11 = pneg %p3495_p10 }
 0x2e5   : > { %p3501_p1 = pnand %p3500_p0, %p3496_p11 }
 0x2e7   : > { %3504 = shalt.err (!%p3501_p1)
}
 0x2e8   : > { %s3570_s18 = smov 128   ;;  %s3571_s19 = smov 8  }
 0x2e9   : > { %3370 = dma.vmem_to_hbm [thread:$0]  (%p3652_p4), %s5105_s8, 256, %s5103_s23, %s2369_s27, %s3570_s18, %s3570_s18, %s3571_s19  }
 0x2ea PF: > { %p3381_p2 = scmp.ge.s32.totalorder %s3559_s29, 2  ;;  %s2429_s16 = sand.u32 1, %s3539_s24  }
 0x2eb   : > { %s2430_s30 = scalar_lea.sflag [#allocation4], %s2429_s16 }
 0x2ec   : > { %p3375_p3 = pnand %p3381_p2, %p3659_p8 }
 0x2ee   : > { %p3376_p5 = pneg %p3375_p3 }
 0x2f0   : > { %3530 = dma.done.wait (%p3376_p5), %s2430_s30, 256  }
 0x2f1   : > { %3532 = vsyncadd (%p3376_p5), %s2430_s30, 4294967040  ;;  %s2439_s10 = scalar_lea.sflag [#allocation6], %s2429_s16 }
 0x2f2   : > { %3534 = dma.done.wait (%p3376_p5), %s2439_s10, 16  }
 0x2f3   : > { %3536 = vsyncadd (%p3376_p5), %s2439_s10, 4294967280  ;;  %s24_s29 = sadd.s32 1, %s3559_s29   ;;  %s5274_s24 = smov %s3543_s25 }
 0x2f4   : > { %p21_p6 = scmp.ge.s32.totalorder %s24_s29, 4   ;;  %s5275_s25 = smov %s3547_s26 }
 0x2f5   : > { %s5276_s26 = smov %s3665_s14  ;;  %s5277_s27 = smov %s3555_s28 }
 0x2f6   : > { %s5278_s28 = smov %s5280_s9  ;;  %23 = sbr.rel (!%p21_p6) target bundleno = 9 (0x9), region = 124 }
 0x2fb   :  { %2443 = vsyncpa [#allocation4], 1 }
 0x2fc   :  { %2445 = vsyncpa [#allocation4 + $0x1], 1 }
 0x2fd   :  { %2446 = vsyncpa [#allocation6], 1 }
 0x2fe   :  { %2448 = vsyncpa [#allocation6 + $0x1], 1 }

</bundles_post_ra>
